<compile_context>
chip_gen: v7x
topology: tpu7x:2x2x1
jax: 0.10.0
libtpu: 0.0.40
codegen_flags: <defaults>
</compile_context>

<pallas_src>
import jax
import jax.numpy as jnp
from jax.experimental import pallas as pl
from jax.experimental.pallas import tpu as pltpu


# ---------------------------------------------------------------------------
# Fused Pallas kernel: one image (one grid step) per invocation.
# ---------------------------------------------------------------------------
def _basic_block_kernel(x_ref, w1_ref, w2_ref, sb1_ref, sb2_ref, out_ref,
                        xpad_ref, h1pad_ref):
    # x_ref    : (1, H, W, Cin)      bf16   input tile (one image, NHWC)
    # w1_ref   : (3, 3, Cin, Cout)   bf16   conv1 weights (HWIO)
    # w2_ref   : (3, 3, Cout, Cout)  bf16   conv2 weights (HWIO)
    # sb1/sb2  : (2, Cout)           f32    folded BN: row0 = scale, row1 = bias
    # out_ref  : (1, H*W, Cout)      f32    output tile
    # xpad_ref : (H+2, W+2, Cin)     f32    VMEM scratch (zero halo for conv1)
    # h1pad_ref: (H+2, W+2, Cout)    f32    VMEM scratch (zero halo for conv2)
    _, H, W, Cin = x_ref.shape
    Cout = out_ref.shape[2]
    M = H * W

    xv = x_ref[0]                                        # (H, W, Cin) bf16

    # ---- stage the input tile with a zero halo, entirely in VMEM ----------
    # (zeroed every grid step: parallel-safe across TensorCores, and trivially cheap)
    xpad_ref[...] = jnp.zeros_like(xpad_ref)
    xpad_ref[1:H + 1, 1:W + 1, :] = xv.astype(xpad_ref.dtype)

    # folded BatchNorm params, loaded once per tile
    s1, b1 = sb1_ref[0:1, :], sb1_ref[1:2, :]
    s2, b2 = sb2_ref[0:1, :], sb2_ref[1:2, :]

    def conv3x3(src_ref, w_ref, cin):
        # 9 taps -> 9 bf16 MXU matmuls accumulated in f32.
        acc = jnp.zeros((M, Cout), jnp.float32)
        for dh in range(3):
            for dw in range(3):
                patch = src_ref[dh:dh + H, dw:dw + W, :].reshape(M, cin)
                acc = acc + jnp.dot(patch.astype(jnp.bfloat16), w_ref[dh, dw],
                                    preferred_element_type=jnp.float32)
        return acc

    # ---- conv1 + bn1 + relu ------------------------------------------------
    h1 = jnp.maximum(conv3x3(xpad_ref, w1_ref, Cin) * s1 + b1, 0.0)

    # ---- stage h1 with a zero halo in VMEM (fused: h1 never touches HBM) ---
    h1pad_ref[...] = jnp.zeros_like(h1pad_ref)
    h1pad_ref[1:H + 1, 1:W + 1, :] = h1.reshape(H, W, Cout)

    # ---- conv2 + bn2 + residual add + relu ---------------------------------
    out = conv3x3(h1pad_ref, w2_ref, Cout) * s2 + b2
    out = out + xv.reshape(M, Cin).astype(jnp.float32)   # residual (Cin == Cout)
    out_ref[0] = jnp.maximum(out, 0.0)


# ---------------------------------------------------------------------------
# Wrapper: layout conversion, BN folding, pallas_call.
# ---------------------------------------------------------------------------
def _fold_bn(gamma, beta, mean, var, eps=1e-5):
    """Fold eval-mode BatchNorm into (scale, bias) stacked as a (2, C) array."""
    scale = gamma / jnp.sqrt(var + eps)
    bias = beta - mean * scale
    return jnp.stack([scale, bias]).astype(jnp.float32)


@jax.jit
def basic_block_forward(x_nchw, params):
    """BasicBlock forward. x_nchw: (N, C, H, W) float32, returns (N, C, H, W)."""
    # NCHW -> NHWC once at the block boundary.  (For a stack of BasicBlocks keep
    # NHWC end-to-end and drop these transposes.)
    x = jnp.transpose(x_nchw, (0, 2, 3, 1))
    N, H, W, Cin = x.shape

    # PyTorch OIHW -> HWIO, bf16 for the MXU.  (Weights are static in a real
    # model: pre-transpose / pre-cast them outside the hot path.)
    w1 = jnp.transpose(params["conv1_w"], (2, 3, 1, 0)).astype(jnp.bfloat16)
    w2 = jnp.transpose(params["conv2_w"], (2, 3, 1, 0)).astype(jnp.bfloat16)
    Cout = w1.shape[-1]
    assert Cin == Cout, "stride=1 / no-downsample BasicBlock requires inplanes == planes"

    sb1 = _fold_bn(params["bn1_gamma"], params["bn1_beta"],
                   params["bn1_mean"], params["bn1_var"])
    sb2 = _fold_bn(params["bn2_gamma"], params["bn2_beta"],
                   params["bn2_mean"], params["bn2_var"])

    x_bf16 = x.astype(jnp.bfloat16)   # half the HBM bytes for the activation DMA

    out = pl.pallas_call(
        _basic_block_kernel,
        out_shape=jax.ShapeDtypeStruct((N, H * W, Cout), jnp.float32),
        grid_spec=pltpu.PrefetchScalarGridSpec(
            num_scalar_prefetch=0,
            grid=(N,),                                          # one image per step
            in_specs=[
                pl.BlockSpec((1, H, W, Cin), lambda b: (b, 0, 0, 0)),     # x
                pl.BlockSpec((3, 3, Cin, Cout), lambda b: (0, 0, 0, 0)),  # w1 (resident)
                pl.BlockSpec((3, 3, Cout, Cout), lambda b: (0, 0, 0, 0)), # w2 (resident)
                pl.BlockSpec((2, Cout), lambda b: (0, 0)),                # bn1 scale/bias
                pl.BlockSpec((2, Cout), lambda b: (0, 0)),                # bn2 scale/bias
            ],
            out_specs=pl.BlockSpec((1, H * W, Cout), lambda b: (b, 0, 0)),
            scratch_shapes=[
                pltpu.VMEM((H + 2, W + 2, Cin), jnp.float32),   # padded x tile
                pltpu.VMEM((H + 2, W + 2, Cout), jnp.float32),  # padded h1 tile
            ],
        ),
        compiler_params=pltpu.CompilerParams(
            dimension_semantics=("parallel",),       # shard batch across TCs on v7x
            vmem_limit_bytes=32 * 1024 * 1024,       # fits v5e scoped / v7x physical
        ),
    )(x_bf16, w1, w2, sb1, sb2)

    out = out.reshape(N, H, W, Cout)                 # free (contiguous) reshape
    return jnp.transpose(out, (0, 3, 1, 2))          # NHWC -> NCHW


# ---------------------------------------------------------------------------
# Pure-JAX f32 reference (module semantics) for the correctness check.
# ---------------------------------------------------------------------------
def _ref_forward(x_nchw, params):
    x = jnp.transpose(x_nchw, (0, 2, 3, 1)).astype(jnp.float32)
    w1 = jnp.transpose(params["conv1_w"], (2, 3, 1, 0))
    w2 = jnp.transpose(params["conv2_w"], (2, 3, 1, 0))

    def conv(inp, w):
        return jax.lax.conv_general_dilated(
            inp, w, window_strides=(1, 1), padding=((1, 1), (1, 1)),
            dimension_numbers=("NHWC", "HWIO", "NHWC"))

    def bn(inp, g, b, m, v, eps=1e-5):
        return (inp - m) / jnp.sqrt(v + eps) * g + b

    h = jax.nn.relu(bn(conv(x, w1), params["bn1_gamma"], params["bn1_beta"],
                       params["bn1_mean"], params["bn1_var"]))
    h = bn(conv(h, w2), params["bn2_gamma"], params["bn2_beta"],
           params["bn2_mean"], params["bn2_var"])
    out = jax.nn.relu(h + x)
    return jnp.transpose(out, (0, 3, 1, 2))


# ---------------------------------------------------------------------------
# Main
# ---------------------------------------------------------------------------
if __name__ == "__main__":
    key = jax.random.PRNGKey(0)
    N, C, H, W = 2, 4, 16, 16          # inplanes = planes = 4, stride = 1

    keys = jax.random.split(key, 10)
    x = jax.random.normal(keys[0], (N, C, H, W), jnp.float32)

    params = {
        "conv1_w":   0.1 * jax.random.normal(keys[1], (C, C, 3, 3), jnp.float32),
        "conv2_w":   0.1 * jax.random.normal(keys[2], (C, C, 3, 3), jnp.float32),
        "bn1_gamma": 1.0 + 0.1 * jax.random.normal(keys[3], (C,), jnp.float32),
        "bn1_beta":  0.1 * jax.random.normal(keys[4], (C,), jnp.float32),
        "bn1_mean":  0.1 * jax.random.normal(keys[5], (C,), jnp.float32),
        "bn1_var":   jnp.abs(1.0 + 0.1 * jax.random.normal(keys[6], (C,), jnp.float32)),
        "bn2_gamma": 1.0 + 0.1 * jax.random.normal(keys[7], (C,), jnp.float32),
        "bn2_beta":  0.1 * jax.random.normal(keys[8], (C,), jnp.float32),
        "bn2_mean":  0.1 * jax.random.normal(keys[9], (C,), jnp.float32),
        "bn2_var":   jnp.abs(1.0 + 0.05 * jnp.arange(C, dtype=jnp.float32)),
    }

    out = jax.block_until_ready(basic_block_forward(x, params))
    ref = jax.block_until_ready(_ref_forward(x, params))

    assert out.shape == (N, C, H, W)
    max_err = float(jnp.max(jnp.abs(out - ref)))
    # bf16 matmul operands (f32 accumulation) -> loosened tolerance vs. the f32 reference.
    assert jnp.allclose(out, ref, atol=5e-2, rtol=5e-2), f"max abs err = {max_err}"

    print("KERNEL_OK")
</pallas_src>

<mosaic_0001>
module attributes {stable_mosaic.version = 11 : i64} {
  func.func @_basic_block_kernel(%arg0: i32, %arg1: memref<1x16x16x4xbf16, #tpu.memory_space<vmem>>, %arg2: memref<3x3x4x4xbf16, #tpu.memory_space<vmem>>, %arg3: memref<3x3x4x4xbf16, #tpu.memory_space<vmem>>, %arg4: memref<2x4xf32, #tpu.memory_space<vmem>>, %arg5: memref<2x4xf32, #tpu.memory_space<vmem>>, %arg6: memref<1x256x4xf32, #tpu.memory_space<vmem>>, %arg7: memref<18x18x4xf32, #tpu.memory_space<vmem>>, %arg8: memref<18x18x4xf32, #tpu.memory_space<vmem>>) attributes {dimension_semantics = [#tpu.dimension_semantics<parallel>], iteration_bounds = array<i64: 2>, scalar_prefetch = 0 : i64, scratch_operands = 2 : i64, tpu.core_type = #tpu.core_type<tc>, window_params = [{transform_indices = @transform_0, window_bounds = array<i64: 1, 16, 16, 4>}, {pipeline_mode = #tpu.pipeline_mode<synchronous>, transform_indices = @transform_1, window_bounds = array<i64: 3, 3, 4, 4>}, {pipeline_mode = #tpu.pipeline_mode<synchronous>, transform_indices = @transform_2, window_bounds = array<i64: 3, 3, 4, 4>}, {pipeline_mode = #tpu.pipeline_mode<synchronous>, transform_indices = @transform_3, window_bounds = array<i64: 2, 4>}, {pipeline_mode = #tpu.pipeline_mode<synchronous>, transform_indices = @transform_4, window_bounds = array<i64: 2, 4>}, {transform_indices = @transform_5, window_bounds = array<i64: 1, 256, 4>}]} {
    %c0 = arith.constant 0 : index
    %c0_0 = arith.constant 0 : index
    %c0_1 = arith.constant 0 : index
    %c0_2 = arith.constant 0 : index
    %0 = vector.load %arg1[%c0, %c0_0, %c0_1, %c0_2] : memref<1x16x16x4xbf16, #tpu.memory_space<vmem>>, vector<1x16x16x4xbf16>
    %1 = vector.shape_cast %0 : vector<1x16x16x4xbf16> to vector<16x16x4xbf16>
    %cst = arith.constant 0.000000e+00 : f32
    %2 = vector.broadcast %cst : f32 to vector<18x18x4xf32>
    %c0_3 = arith.constant 0 : index
    %c0_4 = arith.constant 0 : index
    %c0_5 = arith.constant 0 : index
    %3 = vector.load %arg7[%c0_3, %c0_4, %c0_5] : memref<18x18x4xf32, #tpu.memory_space<vmem>>, vector<18x18x4xf32>
    tpu.vector_store %arg7[%c0_3, %c0_4, %c0_5], %2 {strides = array<i32>} : memref<18x18x4xf32, #tpu.memory_space<vmem>>, vector<18x18x4xf32>,
    %4 = arith.extf %1 : vector<16x16x4xbf16> to vector<16x16x4xf32>
    %c1 = arith.constant 1 : index
    %c1_6 = arith.constant 1 : index
    %c0_7 = arith.constant 0 : index
    %5 = vector.load %arg7[%c1, %c1_6, %c0_7] : memref<18x18x4xf32, #tpu.memory_space<vmem>>, vector<16x16x4xf32>
    tpu.vector_store %arg7[%c1, %c1_6, %c0_7], %4 {strides = array<i32>} : memref<18x18x4xf32, #tpu.memory_space<vmem>>, vector<16x16x4xf32>,
    %c0_8 = arith.constant 0 : index
    %c0_9 = arith.constant 0 : index
    %6 = vector.load %arg4[%c0_8, %c0_9] : memref<2x4xf32, #tpu.memory_space<vmem>>, vector<1x4xf32>
    %c1_10 = arith.constant 1 : index
    %c0_11 = arith.constant 0 : index
    %7 = vector.load %arg4[%c1_10, %c0_11] : memref<2x4xf32, #tpu.memory_space<vmem>>, vector<1x4xf32>
    %c0_12 = arith.constant 0 : index
    %c0_13 = arith.constant 0 : index
    %8 = vector.load %arg5[%c0_12, %c0_13] : memref<2x4xf32, #tpu.memory_space<vmem>>, vector<1x4xf32>
    %c1_14 = arith.constant 1 : index
    %c0_15 = arith.constant 0 : index
    %9 = vector.load %arg5[%c1_14, %c0_15] : memref<2x4xf32, #tpu.memory_space<vmem>>, vector<1x4xf32>
    %cst_16 = arith.constant 0.000000e+00 : f32
    %10 = vector.broadcast %cst_16 : f32 to vector<256x4xf32>
    %c0_17 = arith.constant 0 : index
    %c0_18 = arith.constant 0 : index
    %c0_19 = arith.constant 0 : index
    %11 = vector.load %arg7[%c0_17, %c0_18, %c0_19] : memref<18x18x4xf32, #tpu.memory_space<vmem>>, vector<16x16x4xf32>
    %12 = vector.shape_cast %11 : vector<16x16x4xf32> to vector<256x4xf32>
    %13 = arith.truncf %12 : vector<256x4xf32> to vector<256x4xbf16>
    %c0_20 = arith.constant 0 : index
    %c0_21 = arith.constant 0 : index
    %c0_22 = arith.constant 0 : index
    %c0_23 = arith.constant 0 : index
    %14 = vector.load %arg2[%c0_20, %c0_21, %c0_22, %c0_23] : memref<3x3x4x4xbf16, #tpu.memory_space<vmem>>, vector<1x1x4x4xbf16>
    %15 = vector.shape_cast %14 : vector<1x1x4x4xbf16> to vector<4x4xbf16>
    %cst_24 = arith.constant dense<0.000000e+00> : vector<256x4xf32>
    %16 = tpu.matmul %13, %15, %cst_24 {dimension_numbers = #tpu.dot_dimension_numbers<[1], [0], [0], [1], [0, 0, 1, 1], [], []>} : vector<256x4xbf16>, vector<4x4xbf16>, vector<256x4xf32> -> vector<256x4xf32>
    %17 = arith.addf %10, %16 : vector<256x4xf32>
    %c0_25 = arith.constant 0 : index
    %c1_26 = arith.constant 1 : index
    %c0_27 = arith.constant 0 : index
    %18 = vector.load %arg7[%c0_25, %c1_26, %c0_27] : memref<18x18x4xf32, #tpu.memory_space<vmem>>, vector<16x16x4xf32>
    %19 = vector.shape_cast %18 : vector<16x16x4xf32> to vector<256x4xf32>
    %20 = arith.truncf %19 : vector<256x4xf32> to vector<256x4xbf16>
    %c0_28 = arith.constant 0 : index
    %c1_29 = arith.constant 1 : index
    %c0_30 = arith.constant 0 : index
    %c0_31 = arith.constant 0 : index
    %21 = vector.load %arg2[%c0_28, %c1_29, %c0_30, %c0_31] : memref<3x3x4x4xbf16, #tpu.memory_space<vmem>>, vector<1x1x4x4xbf16>
    %22 = vector.shape_cast %21 : vector<1x1x4x4xbf16> to vector<4x4xbf16>
    %cst_32 = arith.constant dense<0.000000e+00> : vector<256x4xf32>
    %23 = tpu.matmul %20, %22, %cst_32 {dimension_numbers = #tpu.dot_dimension_numbers<[1], [0], [0], [1], [0, 0, 1, 1], [], []>} : vector<256x4xbf16>, vector<4x4xbf16>, vector<256x4xf32> -> vector<256x4xf32>
    %24 = arith.addf %17, %23 : vector<256x4xf32>
    %c0_33 = arith.constant 0 : index
    %c2 = arith.constant 2 : index
    %c0_34 = arith.constant 0 : index
    %25 = vector.load %arg7[%c0_33, %c2, %c0_34] : memref<18x18x4xf32, #tpu.memory_space<vmem>>, vector<16x16x4xf32>
    %26 = vector.shape_cast %25 : vector<16x16x4xf32> to vector<256x4xf32>
    %27 = arith.truncf %26 : vector<256x4xf32> to vector<256x4xbf16>
    %c0_35 = arith.constant 0 : index
    %c2_36 = arith.constant 2 : index
    %c0_37 = arith.constant 0 : index
    %c0_38 = arith.constant 0 : index
    %28 = vector.load %arg2[%c0_35, %c2_36, %c0_37, %c0_38] : memref<3x3x4x4xbf16, #tpu.memory_space<vmem>>, vector<1x1x4x4xbf16>
    %29 = vector.shape_cast %28 : vector<1x1x4x4xbf16> to vector<4x4xbf16>
    %cst_39 = arith.constant dense<0.000000e+00> : vector<256x4xf32>
    %30 = tpu.matmul %27, %29, %cst_39 {dimension_numbers = #tpu.dot_dimension_numbers<[1], [0], [0], [1], [0, 0, 1, 1], [], []>} : vector<256x4xbf16>, vector<4x4xbf16>, vector<256x4xf32> -> vector<256x4xf32>
    %31 = arith.addf %24, %30 : vector<256x4xf32>
    %c1_40 = arith.constant 1 : index
    %c0_41 = arith.constant 0 : index
    %c0_42 = arith.constant 0 : index
    %32 = vector.load %arg7[%c1_40, %c0_41, %c0_42] : memref<18x18x4xf32, #tpu.memory_space<vmem>>, vector<16x16x4xf32>
    %33 = vector.shape_cast %32 : vector<16x16x4xf32> to vector<256x4xf32>
    %34 = arith.truncf %33 : vector<256x4xf32> to vector<256x4xbf16>
    %c1_43 = arith.constant 1 : index
    %c0_44 = arith.constant 0 : index
    %c0_45 = arith.constant 0 : index
    %c0_46 = arith.constant 0 : index
    %35 = vector.load %arg2[%c1_43, %c0_44, %c0_45, %c0_46] : memref<3x3x4x4xbf16, #tpu.memory_space<vmem>>, vector<1x1x4x4xbf16>
    %36 = vector.shape_cast %35 : vector<1x1x4x4xbf16> to vector<4x4xbf16>
    %cst_47 = arith.constant dense<0.000000e+00> : vector<256x4xf32>
    %37 = tpu.matmul %34, %36, %cst_47 {dimension_numbers = #tpu.dot_dimension_numbers<[1], [0], [0], [1], [0, 0, 1, 1], [], []>} : vector<256x4xbf16>, vector<4x4xbf16>, vector<256x4xf32> -> vector<256x4xf32>
    %38 = arith.addf %31, %37 : vector<256x4xf32>
    %c1_48 = arith.constant 1 : index
    %c1_49 = arith.constant 1 : index
    %c0_50 = arith.constant 0 : index
    %39 = vector.load %arg7[%c1_48, %c1_49, %c0_50] : memref<18x18x4xf32, #tpu.memory_space<vmem>>, vector<16x16x4xf32>
    %40 = vector.shape_cast %39 : vector<16x16x4xf32> to vector<256x4xf32>
    %41 = arith.truncf %40 : vector<256x4xf32> to vector<256x4xbf16>
    %c1_51 = arith.constant 1 : index
    %c1_52 = arith.constant 1 : index
    %c0_53 = arith.constant 0 : index
    %c0_54 = arith.constant 0 : index
    %42 = vector.load %arg2[%c1_51, %c1_52, %c0_53, %c0_54] : memref<3x3x4x4xbf16, #tpu.memory_space<vmem>>, vector<1x1x4x4xbf16>
    %43 = vector.shape_cast %42 : vector<1x1x4x4xbf16> to vector<4x4xbf16>
    %cst_55 = arith.constant dense<0.000000e+00> : vector<256x4xf32>
    %44 = tpu.matmul %41, %43, %cst_55 {dimension_numbers = #tpu.dot_dimension_numbers<[1], [0], [0], [1], [0, 0, 1, 1], [], []>} : vector<256x4xbf16>, vector<4x4xbf16>, vector<256x4xf32> -> vector<256x4xf32>
    %45 = arith.addf %38, %44 : vector<256x4xf32>
    %c1_56 = arith.constant 1 : index
    %c2_57 = arith.constant 2 : index
    %c0_58 = arith.constant 0 : index
    %46 = vector.load %arg7[%c1_56, %c2_57, %c0_58] : memref<18x18x4xf32, #tpu.memory_space<vmem>>, vector<16x16x4xf32>
    %47 = vector.shape_cast %46 : vector<16x16x4xf32> to vector<256x4xf32>
    %48 = arith.truncf %47 : vector<256x4xf32> to vector<256x4xbf16>
    %c1_59 = arith.constant 1 : index
    %c2_60 = arith.constant 2 : index
    %c0_61 = arith.constant 0 : index
    %c0_62 = arith.constant 0 : index
    %49 = vector.load %arg2[%c1_59, %c2_60, %c0_61, %c0_62] : memref<3x3x4x4xbf16, #tpu.memory_space<vmem>>, vector<1x1x4x4xbf16>
    %50 = vector.shape_cast %49 : vector<1x1x4x4xbf16> to vector<4x4xbf16>
    %cst_63 = arith.constant dense<0.000000e+00> : vector<256x4xf32>
    %51 = tpu.matmul %48, %50, %cst_63 {dimension_numbers = #tpu.dot_dimension_numbers<[1], [0], [0], [1], [0, 0, 1, 1], [], []>} : vector<256x4xbf16>, vector<4x4xbf16>, vector<256x4xf32> -> vector<256x4xf32>
    %52 = arith.addf %45, %51 : vector<256x4xf32>
    %c2_64 = arith.constant 2 : index
    %c0_65 = arith.constant 0 : index
    %c0_66 = arith.constant 0 : index
    %53 = vector.load %arg7[%c2_64, %c0_65, %c0_66] : memref<18x18x4xf32, #tpu.memory_space<vmem>>, vector<16x16x4xf32>
    %54 = vector.shape_cast %53 : vector<16x16x4xf32> to vector<256x4xf32>
    %55 = arith.truncf %54 : vector<256x4xf32> to vector<256x4xbf16>
    %c2_67 = arith.constant 2 : index
    %c0_68 = arith.constant 0 : index
    %c0_69 = arith.constant 0 : index
    %c0_70 = arith.constant 0 : index
    %56 = vector.load %arg2[%c2_67, %c0_68, %c0_69, %c0_70] : memref<3x3x4x4xbf16, #tpu.memory_space<vmem>>, vector<1x1x4x4xbf16>
    %57 = vector.shape_cast %56 : vector<1x1x4x4xbf16> to vector<4x4xbf16>
    %cst_71 = arith.constant dense<0.000000e+00> : vector<256x4xf32>
    %58 = tpu.matmul %55, %57, %cst_71 {dimension_numbers = #tpu.dot_dimension_numbers<[1], [0], [0], [1], [0, 0, 1, 1], [], []>} : vector<256x4xbf16>, vector<4x4xbf16>, vector<256x4xf32> -> vector<256x4xf32>
    %59 = arith.addf %52, %58 : vector<256x4xf32>
    %c2_72 = arith.constant 2 : index
    %c1_73 = arith.constant 1 : index
    %c0_74 = arith.constant 0 : index
    %60 = vector.load %arg7[%c2_72, %c1_73, %c0_74] : memref<18x18x4xf32, #tpu.memory_space<vmem>>, vector<16x16x4xf32>
    %61 = vector.shape_cast %60 : vector<16x16x4xf32> to vector<256x4xf32>
    %62 = arith.truncf %61 : vector<256x4xf32> to vector<256x4xbf16>
    %c2_75 = arith.constant 2 : index
    %c1_76 = arith.constant 1 : index
    %c0_77 = arith.constant 0 : index
    %c0_78 = arith.constant 0 : index
    %63 = vector.load %arg2[%c2_75, %c1_76, %c0_77, %c0_78] : memref<3x3x4x4xbf16, #tpu.memory_space<vmem>>, vector<1x1x4x4xbf16>
    %64 = vector.shape_cast %63 : vector<1x1x4x4xbf16> to vector<4x4xbf16>
    %cst_79 = arith.constant dense<0.000000e+00> : vector<256x4xf32>
    %65 = tpu.matmul %62, %64, %cst_79 {dimension_numbers = #tpu.dot_dimension_numbers<[1], [0], [0], [1], [0, 0, 1, 1], [], []>} : vector<256x4xbf16>, vector<4x4xbf16>, vector<256x4xf32> -> vector<256x4xf32>
    %66 = arith.addf %59, %65 : vector<256x4xf32>
    %c2_80 = arith.constant 2 : index
    %c2_81 = arith.constant 2 : index
    %c0_82 = arith.constant 0 : index
    %67 = vector.load %arg7[%c2_80, %c2_81, %c0_82] : memref<18x18x4xf32, #tpu.memory_space<vmem>>, vector<16x16x4xf32>
    %68 = vector.shape_cast %67 : vector<16x16x4xf32> to vector<256x4xf32>
    %69 = arith.truncf %68 : vector<256x4xf32> to vector<256x4xbf16>
    %c2_83 = arith.constant 2 : index
    %c2_84 = arith.constant 2 : index
    %c0_85 = arith.constant 0 : index
    %c0_86 = arith.constant 0 : index
    %70 = vector.load %arg2[%c2_83, %c2_84, %c0_85, %c0_86] : memref<3x3x4x4xbf16, #tpu.memory_space<vmem>>, vector<1x1x4x4xbf16>
    %71 = vector.shape_cast %70 : vector<1x1x4x4xbf16> to vector<4x4xbf16>
    %cst_87 = arith.constant dense<0.000000e+00> : vector<256x4xf32>
    %72 = tpu.matmul %69, %71, %cst_87 {dimension_numbers = #tpu.dot_dimension_numbers<[1], [0], [0], [1], [0, 0, 1, 1], [], []>} : vector<256x4xbf16>, vector<4x4xbf16>, vector<256x4xf32> -> vector<256x4xf32>
    %73 = arith.addf %66, %72 : vector<256x4xf32>
    %74 = vector.broadcast %6 : vector<1x4xf32> to vector<256x4xf32>
    %75 = arith.mulf %73, %74 : vector<256x4xf32>
    %76 = vector.broadcast %7 : vector<1x4xf32> to vector<256x4xf32>
    %77 = arith.addf %75, %76 : vector<256x4xf32>
    %cst_88 = arith.constant 0.000000e+00 : f32
    %78 = vector.broadcast %cst_88 : f32 to vector<256x4xf32>
    %79 = arith.maximumf %77, %78 : vector<256x4xf32>
    %cst_89 = arith.constant 0.000000e+00 : f32
    %80 = vector.broadcast %cst_89 : f32 to vector<18x18x4xf32>
    %c0_90 = arith.constant 0 : index
    %c0_91 = arith.constant 0 : index
    %c0_92 = arith.constant 0 : index
    %81 = vector.load %arg8[%c0_90, %c0_91, %c0_92] : memref<18x18x4xf32, #tpu.memory_space<vmem>>, vector<18x18x4xf32>
    tpu.vector_store %arg8[%c0_90, %c0_91, %c0_92], %80 {strides = array<i32>} : memref<18x18x4xf32, #tpu.memory_space<vmem>>, vector<18x18x4xf32>,
    %82 = vector.shape_cast %79 : vector<256x4xf32> to vector<16x16x4xf32>
    %c1_93 = arith.constant 1 : index
    %c1_94 = arith.constant 1 : index
    %c0_95 = arith.constant 0 : index
    %83 = vector.load %arg8[%c1_93, %c1_94, %c0_95] : memref<18x18x4xf32, #tpu.memory_space<vmem>>, vector<16x16x4xf32>
    tpu.vector_store %arg8[%c1_93, %c1_94, %c0_95], %82 {strides = array<i32>} : memref<18x18x4xf32, #tpu.memory_space<vmem>>, vector<16x16x4xf32>,
    %cst_96 = arith.constant 0.000000e+00 : f32
    %84 = vector.broadcast %cst_96 : f32 to vector<256x4xf32>
    %c0_97 = arith.constant 0 : index
    %c0_98 = arith.constant 0 : index
    %c0_99 = arith.constant 0 : index
    %85 = vector.load %arg8[%c0_97, %c0_98, %c0_99] : memref<18x18x4xf32, #tpu.memory_space<vmem>>, vector<16x16x4xf32>
    %86 = vector.shape_cast %85 : vector<16x16x4xf32> to vector<256x4xf32>
    %87 = arith.truncf %86 : vector<256x4xf32> to vector<256x4xbf16>
    %c0_100 = arith.constant 0 : index
    %c0_101 = arith.constant 0 : index
    %c0_102 = arith.constant 0 : index
    %c0_103 = arith.constant 0 : index
    %88 = vector.load %arg3[%c0_100, %c0_101, %c0_102, %c0_103] : memref<3x3x4x4xbf16, #tpu.memory_space<vmem>>, vector<1x1x4x4xbf16>
    %89 = vector.shape_cast %88 : vector<1x1x4x4xbf16> to vector<4x4xbf16>
    %cst_104 = arith.constant dense<0.000000e+00> : vector<256x4xf32>
    %90 = tpu.matmul %87, %89, %cst_104 {dimension_numbers = #tpu.dot_dimension_numbers<[1], [0], [0], [1], [0, 0, 1, 1], [], []>} : vector<256x4xbf16>, vector<4x4xbf16>, vector<256x4xf32> -> vector<256x4xf32>
    %91 = arith.addf %84, %90 : vector<256x4xf32>
    %c0_105 = arith.constant 0 : index
    %c1_106 = arith.constant 1 : index
    %c0_107 = arith.constant 0 : index
    %92 = vector.load %arg8[%c0_105, %c1_106, %c0_107] : memref<18x18x4xf32, #tpu.memory_space<vmem>>, vector<16x16x4xf32>
    %93 = vector.shape_cast %92 : vector<16x16x4xf32> to vector<256x4xf32>
    %94 = arith.truncf %93 : vector<256x4xf32> to vector<256x4xbf16>
    %c0_108 = arith.constant 0 : index
    %c1_109 = arith.constant 1 : index
    %c0_110 = arith.constant 0 : index
    %c0_111 = arith.constant 0 : index
    %95 = vector.load %arg3[%c0_108, %c1_109, %c0_110, %c0_111] : memref<3x3x4x4xbf16, #tpu.memory_space<vmem>>, vector<1x1x4x4xbf16>
    %96 = vector.shape_cast %95 : vector<1x1x4x4xbf16> to vector<4x4xbf16>
    %cst_112 = arith.constant dense<0.000000e+00> : vector<256x4xf32>
    %97 = tpu.matmul %94, %96, %cst_112 {dimension_numbers = #tpu.dot_dimension_numbers<[1], [0], [0], [1], [0, 0, 1, 1], [], []>} : vector<256x4xbf16>, vector<4x4xbf16>, vector<256x4xf32> -> vector<256x4xf32>
    %98 = arith.addf %91, %97 : vector<256x4xf32>
    %c0_113 = arith.constant 0 : index
    %c2_114 = arith.constant 2 : index
    %c0_115 = arith.constant 0 : index
    %99 = vector.load %arg8[%c0_113, %c2_114, %c0_115] : memref<18x18x4xf32, #tpu.memory_space<vmem>>, vector<16x16x4xf32>
    %100 = vector.shape_cast %99 : vector<16x16x4xf32> to vector<256x4xf32>
    %101 = arith.truncf %100 : vector<256x4xf32> to vector<256x4xbf16>
    %c0_116 = arith.constant 0 : index
    %c2_117 = arith.constant 2 : index
    %c0_118 = arith.constant 0 : index
    %c0_119 = arith.constant 0 : index
    %102 = vector.load %arg3[%c0_116, %c2_117, %c0_118, %c0_119] : memref<3x3x4x4xbf16, #tpu.memory_space<vmem>>, vector<1x1x4x4xbf16>
    %103 = vector.shape_cast %102 : vector<1x1x4x4xbf16> to vector<4x4xbf16>
    %cst_120 = arith.constant dense<0.000000e+00> : vector<256x4xf32>
    %104 = tpu.matmul %101, %103, %cst_120 {dimension_numbers = #tpu.dot_dimension_numbers<[1], [0], [0], [1], [0, 0, 1, 1], [], []>} : vector<256x4xbf16>, vector<4x4xbf16>, vector<256x4xf32> -> vector<256x4xf32>
    %105 = arith.addf %98, %104 : vector<256x4xf32>
    %c1_121 = arith.constant 1 : index
    %c0_122 = arith.constant 0 : index
    %c0_123 = arith.constant 0 : index
    %106 = vector.load %arg8[%c1_121, %c0_122, %c0_123] : memref<18x18x4xf32, #tpu.memory_space<vmem>>, vector<16x16x4xf32>
    %107 = vector.shape_cast %106 : vector<16x16x4xf32> to vector<256x4xf32>
    %108 = arith.truncf %107 : vector<256x4xf32> to vector<256x4xbf16>
    %c1_124 = arith.constant 1 : index
    %c0_125 = arith.constant 0 : index
    %c0_126 = arith.constant 0 : index
    %c0_127 = arith.constant 0 : index
    %109 = vector.load %arg3[%c1_124, %c0_125, %c0_126, %c0_127] : memref<3x3x4x4xbf16, #tpu.memory_space<vmem>>, vector<1x1x4x4xbf16>
    %110 = vector.shape_cast %109 : vector<1x1x4x4xbf16> to vector<4x4xbf16>
    %cst_128 = arith.constant dense<0.000000e+00> : vector<256x4xf32>
    %111 = tpu.matmul %108, %110, %cst_128 {dimension_numbers = #tpu.dot_dimension_numbers<[1], [0], [0], [1], [0, 0, 1, 1], [], []>} : vector<256x4xbf16>, vector<4x4xbf16>, vector<256x4xf32> -> vector<256x4xf32>
    %112 = arith.addf %105, %111 : vector<256x4xf32>
    %c1_129 = arith.constant 1 : index
    %c1_130 = arith.constant 1 : index
    %c0_131 = arith.constant 0 : index
    %113 = vector.load %arg8[%c1_129, %c1_130, %c0_131] : memref<18x18x4xf32, #tpu.memory_space<vmem>>, vector<16x16x4xf32>
    %114 = vector.shape_cast %113 : vector<16x16x4xf32> to vector<256x4xf32>
    %115 = arith.truncf %114 : vector<256x4xf32> to vector<256x4xbf16>
    %c1_132 = arith.constant 1 : index
    %c1_133 = arith.constant 1 : index
    %c0_134 = arith.constant 0 : index
    %c0_135 = arith.constant 0 : index
    %116 = vector.load %arg3[%c1_132, %c1_133, %c0_134, %c0_135] : memref<3x3x4x4xbf16, #tpu.memory_space<vmem>>, vector<1x1x4x4xbf16>
    %117 = vector.shape_cast %116 : vector<1x1x4x4xbf16> to vector<4x4xbf16>
    %cst_136 = arith.constant dense<0.000000e+00> : vector<256x4xf32>
    %118 = tpu.matmul %115, %117, %cst_136 {dimension_numbers = #tpu.dot_dimension_numbers<[1], [0], [0], [1], [0, 0, 1, 1], [], []>} : vector<256x4xbf16>, vector<4x4xbf16>, vector<256x4xf32> -> vector<256x4xf32>
    %119 = arith.addf %112, %118 : vector<256x4xf32>
    %c1_137 = arith.constant 1 : index
    %c2_138 = arith.constant 2 : index
    %c0_139 = arith.constant 0 : index
    %120 = vector.load %arg8[%c1_137, %c2_138, %c0_139] : memref<18x18x4xf32, #tpu.memory_space<vmem>>, vector<16x16x4xf32>
    %121 = vector.shape_cast %120 : vector<16x16x4xf32> to vector<256x4xf32>
    %122 = arith.truncf %121 : vector<256x4xf32> to vector<256x4xbf16>
    %c1_140 = arith.constant 1 : index
    %c2_141 = arith.constant 2 : index
    %c0_142 = arith.constant 0 : index
    %c0_143 = arith.constant 0 : index
    %123 = vector.load %arg3[%c1_140, %c2_141, %c0_142, %c0_143] : memref<3x3x4x4xbf16, #tpu.memory_space<vmem>>, vector<1x1x4x4xbf16>
    %124 = vector.shape_cast %123 : vector<1x1x4x4xbf16> to vector<4x4xbf16>
    %cst_144 = arith.constant dense<0.000000e+00> : vector<256x4xf32>
    %125 = tpu.matmul %122, %124, %cst_144 {dimension_numbers = #tpu.dot_dimension_numbers<[1], [0], [0], [1], [0, 0, 1, 1], [], []>} : vector<256x4xbf16>, vector<4x4xbf16>, vector<256x4xf32> -> vector<256x4xf32>
    %126 = arith.addf %119, %125 : vector<256x4xf32>
    %c2_145 = arith.constant 2 : index
    %c0_146 = arith.constant 0 : index
    %c0_147 = arith.constant 0 : index
    %127 = vector.load %arg8[%c2_145, %c0_146, %c0_147] : memref<18x18x4xf32, #tpu.memory_space<vmem>>, vector<16x16x4xf32>
    %128 = vector.shape_cast %127 : vector<16x16x4xf32> to vector<256x4xf32>
    %129 = arith.truncf %128 : vector<256x4xf32> to vector<256x4xbf16>
    %c2_148 = arith.constant 2 : index
    %c0_149 = arith.constant 0 : index
    %c0_150 = arith.constant 0 : index
    %c0_151 = arith.constant 0 : index
    %130 = vector.load %arg3[%c2_148, %c0_149, %c0_150, %c0_151] : memref<3x3x4x4xbf16, #tpu.memory_space<vmem>>, vector<1x1x4x4xbf16>
    %131 = vector.shape_cast %130 : vector<1x1x4x4xbf16> to vector<4x4xbf16>
    %cst_152 = arith.constant dense<0.000000e+00> : vector<256x4xf32>
    %132 = tpu.matmul %129, %131, %cst_152 {dimension_numbers = #tpu.dot_dimension_numbers<[1], [0], [0], [1], [0, 0, 1, 1], [], []>} : vector<256x4xbf16>, vector<4x4xbf16>, vector<256x4xf32> -> vector<256x4xf32>
    %133 = arith.addf %126, %132 : vector<256x4xf32>
    %c2_153 = arith.constant 2 : index
    %c1_154 = arith.constant 1 : index
    %c0_155 = arith.constant 0 : index
    %134 = vector.load %arg8[%c2_153, %c1_154, %c0_155] : memref<18x18x4xf32, #tpu.memory_space<vmem>>, vector<16x16x4xf32>
    %135 = vector.shape_cast %134 : vector<16x16x4xf32> to vector<256x4xf32>
    %136 = arith.truncf %135 : vector<256x4xf32> to vector<256x4xbf16>
    %c2_156 = arith.constant 2 : index
    %c1_157 = arith.constant 1 : index
    %c0_158 = arith.constant 0 : index
    %c0_159 = arith.constant 0 : index
    %137 = vector.load %arg3[%c2_156, %c1_157, %c0_158, %c0_159] : memref<3x3x4x4xbf16, #tpu.memory_space<vmem>>, vector<1x1x4x4xbf16>
    %138 = vector.shape_cast %137 : vector<1x1x4x4xbf16> to vector<4x4xbf16>
    %cst_160 = arith.constant dense<0.000000e+00> : vector<256x4xf32>
    %139 = tpu.matmul %136, %138, %cst_160 {dimension_numbers = #tpu.dot_dimension_numbers<[1], [0], [0], [1], [0, 0, 1, 1], [], []>} : vector<256x4xbf16>, vector<4x4xbf16>, vector<256x4xf32> -> vector<256x4xf32>
    %140 = arith.addf %133, %139 : vector<256x4xf32>
    %c2_161 = arith.constant 2 : index
    %c2_162 = arith.constant 2 : index
    %c0_163 = arith.constant 0 : index
    %141 = vector.load %arg8[%c2_161, %c2_162, %c0_163] : memref<18x18x4xf32, #tpu.memory_space<vmem>>, vector<16x16x4xf32>
    %142 = vector.shape_cast %141 : vector<16x16x4xf32> to vector<256x4xf32>
    %143 = arith.truncf %142 : vector<256x4xf32> to vector<256x4xbf16>
    %c2_164 = arith.constant 2 : index
    %c2_165 = arith.constant 2 : index
    %c0_166 = arith.constant 0 : index
    %c0_167 = arith.constant 0 : index
    %144 = vector.load %arg3[%c2_164, %c2_165, %c0_166, %c0_167] : memref<3x3x4x4xbf16, #tpu.memory_space<vmem>>, vector<1x1x4x4xbf16>
    %145 = vector.shape_cast %144 : vector<1x1x4x4xbf16> to vector<4x4xbf16>
    %cst_168 = arith.constant dense<0.000000e+00> : vector<256x4xf32>
    %146 = tpu.matmul %143, %145, %cst_168 {dimension_numbers = #tpu.dot_dimension_numbers<[1], [0], [0], [1], [0, 0, 1, 1], [], []>} : vector<256x4xbf16>, vector<4x4xbf16>, vector<256x4xf32> -> vector<256x4xf32>
    %147 = arith.addf %140, %146 : vector<256x4xf32>
    %148 = vector.broadcast %8 : vector<1x4xf32> to vector<256x4xf32>
    %149 = arith.mulf %147, %148 : vector<256x4xf32>
    %150 = vector.broadcast %9 : vector<1x4xf32> to vector<256x4xf32>
    %151 = arith.addf %149, %150 : vector<256x4xf32>
    %152 = vector.shape_cast %1 : vector<16x16x4xbf16> to vector<256x4xbf16>
    %153 = arith.extf %152 : vector<256x4xbf16> to vector<256x4xf32>
    %154 = arith.addf %151, %153 : vector<256x4xf32>
    %cst_169 = arith.constant 0.000000e+00 : f32
    %155 = vector.broadcast %cst_169 : f32 to vector<256x4xf32>
    %156 = arith.maximumf %154, %155 : vector<256x4xf32>
    %c0_170 = arith.constant 0 : index
    %c0_171 = arith.constant 0 : index
    %c0_172 = arith.constant 0 : index
    %157 = vector.load %arg6[%c0_170, %c0_171, %c0_172] : memref<1x256x4xf32, #tpu.memory_space<vmem>>, vector<1x256x4xf32>
    %158 = vector.shape_cast %157 : vector<1x256x4xf32> to vector<256x4xf32>
    %159 = vector.shape_cast %156 : vector<256x4xf32> to vector<1x256x4xf32>
    tpu.vector_store %arg6[%c0_170, %c0_171, %c0_172], %159 {strides = array<i32>} : memref<1x256x4xf32, #tpu.memory_space<vmem>>, vector<1x256x4xf32>,
    return
  }
  func.func @transform_0(%arg0: i32) -> (i32, i32, i32, i32) {
    %c0_i32 = arith.constant 0 : i32
    %c0_i32_0 = arith.constant 0 : i32
    %c0_i32_1 = arith.constant 0 : i32
    %c0_i32_2 = arith.constant 0 : i32
    return %arg0, %c0_i32, %c0_i32_0, %c0_i32_1 : i32, i32, i32, i32
  }
  func.func @transform_1(%arg0: i32) -> (i32, i32, i32, i32) {
    %c0_i32 = arith.constant 0 : i32
    %c0_i32_0 = arith.constant 0 : i32
    %c0_i32_1 = arith.constant 0 : i32
    %c0_i32_2 = arith.constant 0 : i32
    %c0_i32_3 = arith.constant 0 : i32
    return %c0_i32, %c0_i32_0, %c0_i32_1, %c0_i32_2 : i32, i32, i32, i32
  }
  func.func @transform_2(%arg0: i32) -> (i32, i32, i32, i32) {
    %c0_i32 = arith.constant 0 : i32
    %c0_i32_0 = arith.constant 0 : i32
    %c0_i32_1 = arith.constant 0 : i32
    %c0_i32_2 = arith.constant 0 : i32
    %c0_i32_3 = arith.constant 0 : i32
    return %c0_i32, %c0_i32_0, %c0_i32_1, %c0_i32_2 : i32, i32, i32, i32
  }
  func.func @transform_3(%arg0: i32) -> (i32, i32) {
    %c0_i32 = arith.constant 0 : i32
    %c0_i32_0 = arith.constant 0 : i32
    %c0_i32_1 = arith.constant 0 : i32
    return %c0_i32, %c0_i32_0 : i32, i32
  }
  func.func @transform_4(%arg0: i32) -> (i32, i32) {
    %c0_i32 = arith.constant 0 : i32
    %c0_i32_0 = arith.constant 0 : i32
    %c0_i32_1 = arith.constant 0 : i32
    return %c0_i32, %c0_i32_0 : i32, i32
  }
  func.func @transform_5(%arg0: i32) -> (i32, i32, i32) {
    %c0_i32 = arith.constant 0 : i32
    %c0_i32_0 = arith.constant 0 : i32
    %c0_i32_1 = arith.constant 0 : i32
    return %arg0, %c0_i32, %c0_i32_0 : i32, i32, i32
  }
}

</mosaic_0001>

<bundles_post_ra>
// kernel: basic_block_forward.1
= control target key start
LH: loop header
LB: loop body
LE: loop exit
PB: predicated region body
PF: predicated region fallthrough
CT: control target
= control target key end

     0   :  { %s7858_s18 = smov 0   ;;  %s9445_s0 = inlined_call_operand.vmem [shape: bf16[2,16,16,4], index: 0, kind: input, shape index: {}]   ;;  %s9446_s1 = inlined_call_operand.vmem [shape: bf16[3,3,4,4], index: 1, kind: input, shape index: {}]   ;;  %s9447_s2 = inlined_call_operand.vmem [shape: bf16[3,3,4,4], index: 2, kind: input, shape index: {}]   ;;  %s9448_s3 = inlined_call_operand.vmem [shape: f32[2,4], index: 3, kind: input, shape index: {}]   ;;  %s9449_s4 = inlined_call_operand.vmem [shape: f32[2,4], index: 4, kind: input, shape index: {}]   ;;  %s9450_s5 = inlined_call_operand.vmem [shape: f32[2,256,4], index: 5, kind: output, shape index: {}]  }
   0x1 LB: > { %s5962_s19 = sadd.s32 4294967295, %s7825_s18   ;;  %p5966_p0 = scmp.ge.s32.totalorder %s7825_s18, 1  ;;  %s7825_s18 = sphi %s7858_s18, %s15_s18  }
   0x2   : > { %p187_p1 = scmp.lt.s32.totalorder %s7825_s18, 3 }
   0x4   : > { %p188_p2 = pnand %p5966_p0, %p187_p1 }
   0x6   : > { %191 = sbr.rel (%p188_p2) target bundleno = 1613 (0x64d), region = 40 }
   0xd   : > { %v5971_v0 = vld [vmem:[%s9446_s1 + $0x2] sm:$0x3]  ;;  %vm530_vm0 = vcmask 1041408   ;;  %vm258_vm1 = vcmask 31744   ;;  %vm261_vm2 = vcmask 25600   ;;  %v7827_v2 = vmov 0.0  }
   0xe   : > { %7792 = vmatprep.subr.msk.bf16.mxu0 %vm530_vm0, %v5971_v0  ;;  %v7871_v1 = vsel %vm530_vm0, %v5971_v0, 0  ;;  %259 = vst.msk [vmem:[#allocation2] sm:$0xff] %vm258_vm1, %v7827_v2  ;;  %260 = vst.msk [vmem:[#allocation2 + $0x8] sm:$0xff] %vm258_vm1, %v7827_v2  ;;  %v8092_v3 = vld [vmem:[%s9446_s1] sm:$0x3]  ;;  %p215_p3 = scmp.lt.s32.totalorder %s5962_s19, 1 }
   0xf   : > { %262 = vst.msk [vmem:[#allocation2 + $0x10] sm:$0x3] %vm261_vm2, %v7827_v2  ;;  %265 = vst.msk [vmem:[#allocation2 + $0x28] sm:$0x3] %vm261_vm2, %v7827_v2  ;;  %6669 = vmatpush3.bf16.msra.mxu0 %v7871_v1  ;;  %v744_v56 = vsel %vm530_vm0, %v8092_v3, 0 }
  0x10   : > { %263 = vst.msk [vmem:[#allocation2 + $0x18] sm:$0xff] %vm258_vm1, %v7827_v2  ;;  %264 = vst.msk [vmem:[#allocation2 + $0x20] sm:$0xff] %vm258_vm1, %v7827_v2  ;;  %7793 = vmatprep.subr.msk.bf16.mxu0 %vm530_vm0, %v8092_v3  ;;  %s9536_s19 = smov (!%p215_p3, %s5962_s19), 1  ;;  %v8284_v59 = vld [vmem:[%s9446_s1 + $0x4] sm:$0x3] }
  0x11   : > { %266 = vst.msk [vmem:[#allocation2 + $0x30] sm:$0xff] %vm258_vm1, %v7827_v2  ;;  %267 = vst.msk [vmem:[#allocation2 + $0x38] sm:$0xff] %vm258_vm1, %v7827_v2  ;;  %s6281_s24 = sshll.u32 %s9536_s19, 7  ;;  %s6282_s22 = sshll.u32 %s9536_s19, 8 }
  0x12   : > { %268 = vst.msk [vmem:[#allocation2 + $0x40] sm:$0x3] %vm261_vm2, %v7827_v2  ;;  %271 = vst.msk [vmem:[#allocation2 + $0x58] sm:$0x3] %vm261_vm2, %v7827_v2  ;;  %s8107_s27 = scalar_lea.vmem %s9445_s0, %s6281_s24  ;;  %s9257_s25 = scalar_lea.vmem %s9450_s5, %s6282_s22 }
  0x13   : > { %269 = vst.msk [vmem:[#allocation2 + $0x48] sm:$0xff] %vm258_vm1, %v7827_v2  ;;  %270 = vst.msk [vmem:[#allocation2 + $0x50] sm:$0xff] %vm258_vm1, %v7827_v2  ;;  %v8110_v4 = vld [vmem:[%s8107_s27] sm:$0xff]   ;;  %v8113_v5 = vld [vmem:[%s8107_s27 + $0x8] sm:$0xff]  }
  0x14   : > { %272 = vst.msk [vmem:[#allocation2 + $0x60] sm:$0xff] %vm258_vm1, %v7827_v2  ;;  %273 = vst.msk [vmem:[#allocation2 + $0x68] sm:$0xff] %vm258_vm1, %v7827_v2  ;;  %v8116_v6 = vld [vmem:[%s8107_s27 + $0x10] sm:$0xff]   ;;  %v9481_v9 = vunpack.c.l.bf16 %v8110_v4  ;;  %v9479_v10 = vunpack.c.h.bf16 %v8110_v4  ;;  %v9482_v11 = vunpack.c.l.bf16 %v8113_v5  ;;  %v9480_v12 = vunpack.c.h.bf16 %v8113_v5  ;;  %v8123_v13 = vld [vmem:[%s8107_s27 + $0x18] sm:$0xff]  }
  0x15   : > { %274 = vst.msk [vmem:[#allocation2 + $0x70] sm:$0x3] %vm261_vm2, %v7827_v2  ;;  %277 = vst.msk [vmem:[#allocation2 + $0x88] sm:$0x3] %vm261_vm2, %v7827_v2  ;;  %v432_v7 = vld [vmem:[#allocation2 + $0x1] sm:$0xff]  ;;  %v9477_v15 = vunpack.c.l.bf16 %v8116_v6  ;;  %v9475_v16 = vunpack.c.h.bf16 %v8116_v6  ;;  %v9478_v17 = vunpack.c.l.bf16 %v8123_v13  ;;  %v8135_v20 = vld [vmem:[%s8107_s27 + $0x30] sm:$0xff]   ;;  %v9476_v21 = vunpack.c.h.bf16 %v8123_v13 }
  0x16   : > { %275 = vst.msk [vmem:[#allocation2 + $0x78] sm:$0xff] %vm258_vm1, %v7827_v2  ;;  %276 = vst.msk [vmem:[#allocation2 + $0x80] sm:$0xff] %vm258_vm1, %v7827_v2  ;;  %v433_v8 = vld [vmem:[#allocation2 + $0x9] sm:$0xff]  ;;  %v8129_v18 = vld [vmem:[%s8107_s27 + $0x20] sm:$0xff]   ;;  %v9467_v29 = vunpack.c.l.bf16 %v8135_v20  ;;  %v9465_v30 = vunpack.c.h.bf16 %v8135_v20 }
  0x17   : > { %278 = vst.msk [vmem:[#allocation2 + $0x90] sm:$0xff] %vm258_vm1, %v7827_v2  ;;  %279 = vst.msk [vmem:[#allocation2 + $0x98] sm:$0xff] %vm258_vm1, %v7827_v2  ;;  %v464_v14 = vpack.c.bf16 %v433_v8, %v432_v7  ;;  %v8132_v19 = vld [vmem:[%s8107_s27 + $0x28] sm:$0xff]   ;;  %v9473_v22 = vunpack.c.l.bf16 %v8129_v18  ;;  %v9469_v23 = vunpack.c.h.bf16 %v8129_v18  ;;  %v8154_v25 = vld [vmem:[%s8107_s27 + $0x38] sm:$0xff]  }
  0x18   : > { %280 = vst.msk [vmem:[#allocation2 + $0xa0] sm:$0x3] %vm261_vm2, %v7827_v2  ;;  %283 = vst.msk [vmem:[#allocation2 + $0xb8] sm:$0x3] %vm261_vm2, %v7827_v2  ;;  %v9474_v24 = vunpack.c.l.bf16 %v8132_v19  ;;  %v8157_v26 = vld [vmem:[%s8107_s27 + $0x40] sm:$0xff]   ;;  %v8160_v27 = vld [vmem:[%s8107_s27 + $0x48] sm:$0xff]   ;;  %v9470_v28 = vunpack.c.h.bf16 %v8132_v19  ;;  %v9468_v31 = vunpack.c.l.bf16 %v8154_v25  ;;  %v9466_v35 = vunpack.c.h.bf16 %v8154_v25 }
  0x19   : > { %281 = vst.msk [vmem:[#allocation2 + $0xa8] sm:$0xff] %vm258_vm1, %v7827_v2  ;;  %282 = vst.msk [vmem:[#allocation2 + $0xb0] sm:$0xff] %vm258_vm1, %v7827_v2  ;;  %6670 = vmatprep.mubr.msk.bf16.mxu0 %vm258_vm1, %v464_v14  ;;  %v8177_v32 = vld [vmem:[%s8107_s27 + $0x50] sm:$0xff]   ;;  %v8180_v33 = vld [vmem:[%s8107_s27 + $0x58] sm:$0xff]   ;;  %v9463_v36 = vunpack.c.l.bf16 %v8157_v26  ;;  %v9461_v37 = vunpack.c.h.bf16 %v8157_v26  ;;  %v9464_v38 = vunpack.c.l.bf16 %v8160_v27  ;;  %v9462_v41 = vunpack.c.h.bf16 %v8160_v27 }
  0x1a   : > { %284 = vst.msk [vmem:[#allocation2 + $0xc0] sm:$0xff] %vm258_vm1, %v7827_v2  ;;  %285 = vst.msk [vmem:[#allocation2 + $0xc8] sm:$0xff] %vm258_vm1, %v7827_v2  ;;  %v8183_v34 = vld [vmem:[%s8107_s27 + $0x60] sm:$0xff]   ;;  %v8202_v39 = vld [vmem:[%s8107_s27 + $0x68] sm:$0xff]   ;;  %v9459_v42 = vunpack.c.l.bf16 %v8177_v32  ;;  %v9457_v43 = vunpack.c.h.bf16 %v8177_v32  ;;  %v9460_v44 = vunpack.c.l.bf16 %v8180_v33  ;;  %v9458_v45 = vunpack.c.h.bf16 %v8180_v33 }
  0x1b   : > { %286 = vst.msk [vmem:[#allocation2 + $0xd0] sm:$0x3] %vm261_vm2, %v7827_v2  ;;  %289 = vst.msk [vmem:[#allocation2 + $0xe8] sm:$0x3] %vm261_vm2, %v7827_v2  ;;  %v8205_v40 = vld [vmem:[%s8107_s27 + $0x70] sm:$0xff]   ;;  %v9455_v46 = vunpack.c.l.bf16 %v8183_v34  ;;  %v9453_v47 = vunpack.c.h.bf16 %v8183_v34  ;;  %v9456_v48 = vunpack.c.l.bf16 %v8202_v39  ;;  %v9454_v49 = vunpack.c.h.bf16 %v8202_v39 }
  0x1c   : > { %287 = vst.msk [vmem:[#allocation2 + $0xd8] sm:$0xff] %vm258_vm1, %v7827_v2  ;;  %288 = vst.msk [vmem:[#allocation2 + $0xe0] sm:$0xff] %vm258_vm1, %v7827_v2  ;;  %v9452_v50 = vunpack.c.l.bf16 %v8205_v40  ;;  %v9451_v51 = vunpack.c.h.bf16 %v8205_v40 }
  0x1d   : > { %290 = vst.msk [vmem:[#allocation2 + $0xf0] sm:$0xff] %vm258_vm1, %v7827_v2  ;;  %291 = vst.msk [vmem:[#allocation2 + $0xf8] sm:$0xff] %vm258_vm1, %v7827_v2 }
  0x1e   : > { %292 = vst.msk [vmem:[#allocation2 + $0x100] sm:$0x3] %vm261_vm2, %v7827_v2  ;;  %295 = vst.msk [vmem:[#allocation2 + $0x118] sm:$0x3] %vm261_vm2, %v7827_v2 }
  0x1f   : > { %293 = vst.msk [vmem:[#allocation2 + $0x108] sm:$0xff] %vm258_vm1, %v7827_v2  ;;  %294 = vst.msk [vmem:[#allocation2 + $0x110] sm:$0xff] %vm258_vm1, %v7827_v2 }
  0x20   : > { %296 = vst.msk [vmem:[#allocation2 + $0x120] sm:$0xff] %vm258_vm1, %v7827_v2  ;;  %297 = vst.msk [vmem:[#allocation2 + $0x128] sm:$0xff] %vm258_vm1, %v7827_v2 }
  0x21   : > { %298 = vst.msk [vmem:[#allocation2 + $0x130] sm:$0x3] %vm261_vm2, %v7827_v2  ;;  %301 = vst.msk [vmem:[#allocation2 + $0x148] sm:$0x3] %vm261_vm2, %v7827_v2 }
  0x22   : > { %299 = vst.msk [vmem:[#allocation2 + $0x138] sm:$0xff] %vm258_vm1, %v7827_v2  ;;  %300 = vst.msk [vmem:[#allocation2 + $0x140] sm:$0xff] %vm258_vm1, %v7827_v2 }
  0x23   : > { %302 = vst.msk [vmem:[#allocation2 + $0x150] sm:$0xff] %vm258_vm1, %v7827_v2  ;;  %303 = vst.msk [vmem:[#allocation2 + $0x158] sm:$0xff] %vm258_vm1, %v7827_v2 }
  0x24   : > { %304 = vst.msk [vmem:[#allocation2 + $0x160] sm:$0x3] %vm261_vm2, %v7827_v2  ;;  %307 = vst.msk [vmem:[#allocation2 + $0x178] sm:$0x3] %vm261_vm2, %v7827_v2 }
  0x25   : > { %305 = vst.msk [vmem:[#allocation2 + $0x168] sm:$0xff] %vm258_vm1, %v7827_v2  ;;  %306 = vst.msk [vmem:[#allocation2 + $0x170] sm:$0xff] %vm258_vm1, %v7827_v2 }
  0x26   : > { %308 = vst.msk [vmem:[#allocation2 + $0x180] sm:$0xff] %vm258_vm1, %v7827_v2  ;;  %309 = vst.msk [vmem:[#allocation2 + $0x188] sm:$0xff] %vm258_vm1, %v7827_v2 }
  0x27   : > { %310 = vst.msk [vmem:[#allocation2 + $0x190] sm:$0x3] %vm261_vm2, %v7827_v2  ;;  %313 = vst.msk [vmem:[#allocation2 + $0x1a8] sm:$0x3] %vm261_vm2, %v7827_v2 }
  0x28   : > { %311 = vst.msk [vmem:[#allocation2 + $0x198] sm:$0xff] %vm258_vm1, %v7827_v2  ;;  %312 = vst.msk [vmem:[#allocation2 + $0x1a0] sm:$0xff] %vm258_vm1, %v7827_v2 }
  0x29   : > { %3070 = vst.msk [vmem:[#allocation3] sm:$0xff] %vm258_vm1, %v7827_v2  ;;  %3071 = vst.msk [vmem:[#allocation3 + $0x8] sm:$0xff] %vm258_vm1, %v7827_v2 }
  0x2a   : > { %3072 = vst.msk [vmem:[#allocation3 + $0x10] sm:$0x3] %vm261_vm2, %v7827_v2  ;;  %3075 = vst.msk [vmem:[#allocation3 + $0x28] sm:$0x3] %vm261_vm2, %v7827_v2 }
  0x2b   : > { %3073 = vst.msk [vmem:[#allocation3 + $0x18] sm:$0xff] %vm258_vm1, %v7827_v2  ;;  %3074 = vst.msk [vmem:[#allocation3 + $0x20] sm:$0xff] %vm258_vm1, %v7827_v2 }
  0x2c   : > { %3076 = vst.msk [vmem:[#allocation3 + $0x30] sm:$0xff] %vm258_vm1, %v7827_v2  ;;  %3077 = vst.msk [vmem:[#allocation3 + $0x38] sm:$0xff] %vm258_vm1, %v7827_v2 }
  0x2d   : > { %3078 = vst.msk [vmem:[#allocation3 + $0x40] sm:$0x3] %vm261_vm2, %v7827_v2  ;;  %3081 = vst.msk [vmem:[#allocation3 + $0x58] sm:$0x3] %vm261_vm2, %v7827_v2 }
  0x2e   : > { %3079 = vst.msk [vmem:[#allocation3 + $0x48] sm:$0xff] %vm258_vm1, %v7827_v2  ;;  %3080 = vst.msk [vmem:[#allocation3 + $0x50] sm:$0xff] %vm258_vm1, %v7827_v2 }
  0x2f   : > { %3082 = vst.msk [vmem:[#allocation3 + $0x60] sm:$0xff] %vm258_vm1, %v7827_v2  ;;  %3083 = vst.msk [vmem:[#allocation3 + $0x68] sm:$0xff] %vm258_vm1, %v7827_v2 }
  0x30   : > { %3084 = vst.msk [vmem:[#allocation3 + $0x70] sm:$0x3] %vm261_vm2, %v7827_v2  ;;  %3087 = vst.msk [vmem:[#allocation3 + $0x88] sm:$0x3] %vm261_vm2, %v7827_v2 }
  0x31   : > { %3085 = vst.msk [vmem:[#allocation3 + $0x78] sm:$0xff] %vm258_vm1, %v7827_v2  ;;  %3086 = vst.msk [vmem:[#allocation3 + $0x80] sm:$0xff] %vm258_vm1, %v7827_v2 }
  0x32   : > { %3088 = vst.msk [vmem:[#allocation3 + $0x90] sm:$0xff] %vm258_vm1, %v7827_v2  ;;  %3089 = vst.msk [vmem:[#allocation3 + $0x98] sm:$0xff] %vm258_vm1, %v7827_v2 }
  0x33   : > { %3090 = vst.msk [vmem:[#allocation3 + $0xa0] sm:$0x3] %vm261_vm2, %v7827_v2  ;;  %3093 = vst.msk [vmem:[#allocation3 + $0xb8] sm:$0x3] %vm261_vm2, %v7827_v2 }
  0x34   : > { %3091 = vst.msk [vmem:[#allocation3 + $0xa8] sm:$0xff] %vm258_vm1, %v7827_v2  ;;  %3092 = vst.msk [vmem:[#allocation3 + $0xb0] sm:$0xff] %vm258_vm1, %v7827_v2 }
  0x35   : > { %3094 = vst.msk [vmem:[#allocation3 + $0xc0] sm:$0xff] %vm258_vm1, %v7827_v2  ;;  %3095 = vst.msk [vmem:[#allocation3 + $0xc8] sm:$0xff] %vm258_vm1, %v7827_v2 }
  0x36   : > { %3096 = vst.msk [vmem:[#allocation3 + $0xd0] sm:$0x3] %vm261_vm2, %v7827_v2  ;;  %3099 = vst.msk [vmem:[#allocation3 + $0xe8] sm:$0x3] %vm261_vm2, %v7827_v2 }
  0x37   : > { %3097 = vst.msk [vmem:[#allocation3 + $0xd8] sm:$0xff] %vm258_vm1, %v7827_v2  ;;  %3098 = vst.msk [vmem:[#allocation3 + $0xe0] sm:$0xff] %vm258_vm1, %v7827_v2 }
  0x38   : > { %3100 = vst.msk [vmem:[#allocation3 + $0xf0] sm:$0xff] %vm258_vm1, %v7827_v2  ;;  %3101 = vst.msk [vmem:[#allocation3 + $0xf8] sm:$0xff] %vm258_vm1, %v7827_v2 }
  0x39   : > { %3102 = vst.msk [vmem:[#allocation3 + $0x100] sm:$0x3] %vm261_vm2, %v7827_v2  ;;  %3105 = vst.msk [vmem:[#allocation3 + $0x118] sm:$0x3] %vm261_vm2, %v7827_v2 }
  0x3a   : > { %3103 = vst.msk [vmem:[#allocation3 + $0x108] sm:$0xff] %vm258_vm1, %v7827_v2  ;;  %3104 = vst.msk [vmem:[#allocation3 + $0x110] sm:$0xff] %vm258_vm1, %v7827_v2 }
  0x3b   : > { %3106 = vst.msk [vmem:[#allocation3 + $0x120] sm:$0xff] %vm258_vm1, %v7827_v2  ;;  %3107 = vst.msk [vmem:[#allocation3 + $0x128] sm:$0xff] %vm258_vm1, %v7827_v2 }
  0x3c   : > { %3108 = vst.msk [vmem:[#allocation3 + $0x130] sm:$0x3] %vm261_vm2, %v7827_v2  ;;  %3111 = vst.msk [vmem:[#allocation3 + $0x148] sm:$0x3] %vm261_vm2, %v7827_v2 }
  0x3d   : > { %3109 = vst.msk [vmem:[#allocation3 + $0x138] sm:$0xff] %vm258_vm1, %v7827_v2  ;;  %3110 = vst.msk [vmem:[#allocation3 + $0x140] sm:$0xff] %vm258_vm1, %v7827_v2 }
  0x3e   : > { %3112 = vst.msk [vmem:[#allocation3 + $0x150] sm:$0xff] %vm258_vm1, %v7827_v2  ;;  %3113 = vst.msk [vmem:[#allocation3 + $0x158] sm:$0xff] %vm258_vm1, %v7827_v2 }
  0x3f   : > { %3114 = vst.msk [vmem:[#allocation3 + $0x160] sm:$0x3] %vm261_vm2, %v7827_v2  ;;  %3117 = vst.msk [vmem:[#allocation3 + $0x178] sm:$0x3] %vm261_vm2, %v7827_v2 }
  0x40   : > { %3115 = vst.msk [vmem:[#allocation3 + $0x168] sm:$0xff] %vm258_vm1, %v7827_v2  ;;  %3116 = vst.msk [vmem:[#allocation3 + $0x170] sm:$0xff] %vm258_vm1, %v7827_v2 }
  0x41   : > { %3118 = vst.msk [vmem:[#allocation3 + $0x180] sm:$0xff] %vm258_vm1, %v7827_v2  ;;  %3119 = vst.msk [vmem:[#allocation3 + $0x188] sm:$0xff] %vm258_vm1, %v7827_v2 }
  0x42   : > { %3120 = vst.msk [vmem:[#allocation3 + $0x190] sm:$0x3] %vm261_vm2, %v7827_v2  ;;  %3123 = vst.msk [vmem:[#allocation3 + $0x1a8] sm:$0x3] %vm261_vm2, %v7827_v2 }
  0x43   : > { %3121 = vst.msk [vmem:[#allocation3 + $0x198] sm:$0xff] %vm258_vm1, %v7827_v2  ;;  %3122 = vst.msk [vmem:[#allocation3 + $0x1a0] sm:$0xff] %vm258_vm1, %v7827_v2 }
  0x44   : > { %347 = vst.msk [vmem:[#allocation2 + $0x19] sm:$0xff] %vm258_vm1, %v9481_v9  ;;  %348 = vst.msk [vmem:[#allocation2 + $0x21] sm:$0xff] %vm258_vm1, %v9479_v10 }
  0x45   : > { %349 = vst.msk [vmem:[#allocation2 + $0x31] sm:$0xff] %vm258_vm1, %v9482_v11  ;;  %350 = vst.msk [vmem:[#allocation2 + $0x39] sm:$0xff] %vm258_vm1, %v9480_v12 }
  0x46   : > { %351 = vst.msk [vmem:[#allocation2 + $0x49] sm:$0xff] %vm258_vm1, %v9477_v15  ;;  %352 = vst.msk [vmem:[#allocation2 + $0x51] sm:$0xff] %vm258_vm1, %v9475_v16 }
  0x47   : > { %353 = vst.msk [vmem:[#allocation2 + $0x61] sm:$0xff] %vm258_vm1, %v9478_v17  ;;  %9493 = vst [vmem:[#allocation4_spill] sm:$0xff] %v8177_v32 }
  0x48   : > { %9494 = vst [vmem:[#allocation5_spill] sm:$0xff] %v8183_v34  ;;  %354 = vst.msk [vmem:[#allocation2 + $0x69] sm:$0xff] %vm258_vm1, %v9476_v21 }
  0x49   : > { %355 = vst.msk [vmem:[#allocation2 + $0x79] sm:$0xff] %vm258_vm1, %v9473_v22  ;;  %356 = vst.msk [vmem:[#allocation2 + $0x81] sm:$0xff] %vm258_vm1, %v9469_v23 }
  0x4a   : > { %357 = vst.msk [vmem:[#allocation2 + $0x91] sm:$0xff] %vm258_vm1, %v9474_v24  ;;  %9495 = vst [vmem:[#allocation6_spill] sm:$0xff] %v8202_v39 }
  0x4b   : > { %9496 = vst [vmem:[#allocation7_spill] sm:$0xff] %v8205_v40  ;;  %358 = vst.msk [vmem:[#allocation2 + $0x99] sm:$0xff] %vm258_vm1, %v9470_v28  ;;  %v434_v52 = vld [vmem:[#allocation2 + $0x19] sm:$0xff]  ;;  %v435_v53 = vld [vmem:[#allocation2 + $0x21] sm:$0xff] }
  0x4c   : > { %359 = vst.msk [vmem:[#allocation2 + $0xa9] sm:$0xff] %vm258_vm1, %v9467_v29  ;;  %360 = vst.msk [vmem:[#allocation2 + $0xb1] sm:$0xff] %vm258_vm1, %v9465_v30  ;;  %v436_v54 = vld [vmem:[#allocation2 + $0x31] sm:$0xff]  ;;  %v8275_v55 = vpack.c.bf16 %v435_v53, %v434_v52  ;;  %v437_v57 = vld [vmem:[#allocation2 + $0x39] sm:$0xff] }
  0x4d   : > { %361 = vst.msk [vmem:[#allocation2 + $0xc1] sm:$0xff] %vm258_vm1, %v9468_v31  ;;  %362 = vst.msk [vmem:[#allocation2 + $0xc9] sm:$0xff] %vm258_vm1, %v9466_v35  ;;  %v8279_v58 = vpack.c.bf16 %v437_v57, %v436_v54  ;;  %v438_v60 = vld [vmem:[#allocation2 + $0x49] sm:$0xff]  ;;  %v439_v61 = vld [vmem:[#allocation2 + $0x51] sm:$0xff] }
  0x4e   : > { %363 = vst.msk [vmem:[#allocation2 + $0xd9] sm:$0xff] %vm258_vm1, %v9463_v36  ;;  %364 = vst.msk [vmem:[#allocation2 + $0xe1] sm:$0xff] %vm258_vm1, %v9461_v37  ;;  %6671 = vmatmul.mubr.msk.bf16.vlgmr.msra.gmra.mrb[0].mxu0 %vm258_vm1, %v8275_v55  ;;  %v440_v62 = vld [vmem:[#allocation2 + $0x61] sm:$0xff]  ;;  %v8292_v0 = vpack.c.bf16 %v439_v61, %v438_v60  ;;  %v8403_v31 = vld [vmem:[%s8107_s27 + $0x78] sm:$0xff]  }
  0x4f   : > { %365 = vst.msk [vmem:[#allocation2 + $0xf1] sm:$0xff] %vm258_vm1, %v9464_v38  ;;  %366 = vst.msk [vmem:[#allocation2 + $0xf9] sm:$0xff] %vm258_vm1, %v9462_v41  ;;  %6703 = vmatpush3.bf16.msra.mxu0 %v744_v56  ;;  %6674 = vmatprep.mubr.msk.bf16.mxu0 %vm258_vm1, %v8279_v58  ;;  %v441_v63 = vld [vmem:[#allocation2 + $0x69] sm:$0xff]  ;;  %v9471_v28 = vunpack.c.l.bf16 %v8403_v31  ;;  %v911_v22 = vld [vmem:[#allocation2 + $0x32] sm:$0xff] }
  0x50   : > { %367 = vst.msk [vmem:[#allocation2 + $0x109] sm:$0xff] %vm258_vm1, %v9459_v42  ;;  %368 = vst.msk [vmem:[#allocation2 + $0x111] sm:$0xff] %vm258_vm1, %v9457_v43  ;;  %7794 = vmatprep.subr.msk.bf16.mxu0 %vm530_vm0, %v8284_v59  ;;  %v8294_v1 = vpack.c.bf16 %v441_v63, %v440_v62  ;;  %v442_v2 = vld [vmem:[#allocation2 + $0x79] sm:$0xff]  ;;  %v443_v3 = vld [vmem:[#allocation2 + $0x81] sm:$0xff]  ;;  %v1006_v42 = vsel %vm530_vm0, %v8284_v59, 0 }
  0x51   : > { %369 = vst.msk [vmem:[#allocation2 + $0x121] sm:$0xff] %vm258_vm1, %v9460_v44  ;;  %370 = vst.msk [vmem:[#allocation2 + $0x129] sm:$0xff] %vm258_vm1, %v9458_v45  ;;  %v444_v7 = vld [vmem:[#allocation2 + $0x91] sm:$0xff]  ;;  %v8300_v14 = vpack.c.bf16 %v443_v3, %v442_v2  ;;  %v912_v24 = vld [vmem:[#allocation2 + $0x3a] sm:$0xff] }
  0x52   : > { %371 = vst.msk [vmem:[#allocation2 + $0x139] sm:$0xff] %vm258_vm1, %v9455_v46  ;;  %372 = vst.msk [vmem:[#allocation2 + $0x141] sm:$0xff] %vm258_vm1, %v9453_v47  ;;  %v445_v8 = vld [vmem:[#allocation2 + $0x99] sm:$0xff]  ;;  %v8428_v21 = vpack.c.bf16 %v912_v24, %v911_v22 }
  0x53   : > { %373 = vst.msk [vmem:[#allocation2 + $0x151] sm:$0xff] %vm258_vm1, %v9456_v48  ;;  %374 = vst.msk [vmem:[#allocation2 + $0x159] sm:$0xff] %vm258_vm1, %v9454_v49  ;;  %v8302_v52 = vpack.c.bf16 %v445_v8, %v444_v7  ;;  %v446_v53 = vld [vmem:[#allocation2 + $0xa9] sm:$0xff]  ;;  %v447_v54 = vld [vmem:[#allocation2 + $0xb1] sm:$0xff] }
  0x54   : > { %375 = vst.msk [vmem:[#allocation2 + $0x169] sm:$0xff] %vm258_vm1, %v9452_v50  ;;  %376 = vst.msk [vmem:[#allocation2 + $0x171] sm:$0xff] %vm258_vm1, %v9451_v51  ;;  %v448_v56 = vld [vmem:[#allocation2 + $0xc1] sm:$0xff]  ;;  %v449_v57 = vld [vmem:[#allocation2 + $0xc9] sm:$0xff]  ;;  %v8308_v60 = vpack.c.bf16 %v447_v54, %v446_v53 }
  0x55   : > { %v8310_v61 = vpack.c.bf16 %v449_v57, %v448_v56  ;;  %v450_v62 = vld [vmem:[#allocation2 + $0xd9] sm:$0xff]  ;;  %v451_v63 = vld [vmem:[#allocation2 + $0xe1] sm:$0xff]  ;;  %9497 = vst [vmem:[#allocation8_spill] sm:$0xff] %v8403_v31  ;;  %377 = vst.msk [vmem:[#allocation2 + $0x181] sm:$0xff] %vm258_vm1, %v9471_v28 }
  0x56   : > { %6675 = vmatmul.mubr.msk.bf16.gmra.mrb[4].mxu0 %vm258_vm1, %v8292_v0  ;;  %v452_v2 = vld [vmem:[#allocation2 + $0xf1] sm:$0xff]  ;;  %v453_v3 = vld [vmem:[#allocation2 + $0xf9] sm:$0xff]  ;;  %v8316_v7 = vpack.c.bf16 %v451_v63, %v450_v62 }
  0x57   : > { %6678 = vmatprep.mubr.msk.bf16.mxu0 %vm258_vm1, %v8294_v1  ;;  %v8318_v8 = vpack.c.bf16 %v453_v3, %v452_v2  ;;  %v454_v53 = vld [vmem:[#allocation2 + $0x109] sm:$0xff]  ;;  %v455_v54 = vld [vmem:[#allocation2 + $0x111] sm:$0xff]  ;;  %v909_v28 = vld [vmem:[#allocation2 + $0x1a] sm:$0xff] }
  0x58   : > { %v456_v56 = vld [vmem:[#allocation2 + $0x121] sm:$0xff]  ;;  %v457_v57 = vld [vmem:[#allocation2 + $0x129] sm:$0xff]  ;;  %v8324_v51 = vpack.c.bf16 %v455_v54, %v454_v53 }
  0x59   : > { %v8326_v50 = vpack.c.bf16 %v457_v57, %v456_v56  ;;  %v458_v62 = vld [vmem:[#allocation2 + $0x139] sm:$0xff]  ;;  %v459_v63 = vld [vmem:[#allocation2 + $0x141] sm:$0xff] }
  0x5a   : > { %v460_v2 = vld [vmem:[#allocation2 + $0x151] sm:$0xff]  ;;  %v461_v3 = vld [vmem:[#allocation2 + $0x159] sm:$0xff]  ;;  %v8332_v47 = vpack.c.bf16 %v459_v63, %v458_v62  ;;  %v384_v57 = vld [vmem:[#allocation2 + $0x8] sm:$0xff] }
  0x5b   : > { %v8334_v49 = vpack.c.bf16 %v461_v3, %v460_v2  ;;  %v462_v53 = vld [vmem:[#allocation2 + $0x169] sm:$0xff]  ;;  %v463_v54 = vld [vmem:[#allocation2 + $0x171] sm:$0xff]  ;;  %v383_v56 = vld [vmem:[#allocation2] sm:$0xff] }
  0x5c   : > { %v8340_v46 = vpack.c.bf16 %v463_v54, %v462_v53  ;;  %v415_v48 = vpack.c.bf16 %v384_v57, %v383_v56  ;;  %v385_v62 = vld [vmem:[#allocation2 + $0x18] sm:$0xff]  ;;  %v386_v63 = vld [vmem:[#allocation2 + $0x20] sm:$0xff]  ;;  %v387_v2 = vld [vmem:[#allocation2 + $0x30] sm:$0xff] }
  0x5d   : > { %v388_v3 = vld [vmem:[#allocation2 + $0x38] sm:$0xff]  ;;  %v8345_v43 = vpack.c.bf16 %v386_v63, %v385_v62  ;;  %v8354_v53 = vld [vmem:[%s9446_s1 + $0x6] sm:$0x3]  ;;  %v390_v54 = vld [vmem:[#allocation2 + $0x50] sm:$0xff] }
  0x5e   : > { %6679 = vmatmul.mubr.msk.bf16.gmra.mrb[8].mxu0 %vm258_vm1, %v8300_v14  ;;  %v8347_v45 = vpack.c.bf16 %v388_v3, %v387_v2  ;;  %v391_v56 = vld [vmem:[#allocation2 + $0x60] sm:$0xff]  ;;  %v392_v57 = vld [vmem:[#allocation2 + $0x68] sm:$0xff]  ;;  %v395_v2 = vld [vmem:[#allocation2 + $0x90] sm:$0xff]  ;;  %v1300_v15 = vsel %vm530_vm0, %v8354_v53, 0 }
  0x5f   : > { %6682 = vmatprep.mubr.msk.bf16.mxu0 %vm258_vm1, %v8302_v52  ;;  %v8364_v62 = vpack.c.bf16 %v392_v57, %v391_v56  ;;  %v394_v63 = vld [vmem:[#allocation2 + $0x80] sm:$0xff]  ;;  %v396_v3 = vld [vmem:[#allocation2 + $0x98] sm:$0xff]  ;;  %v400_v57 = vld [vmem:[#allocation2 + $0xc8] sm:$0xff] }
  0x60   : > { %v8372_v37 = vpack.c.bf16 %v396_v3, %v395_v2  ;;  %v399_v56 = vld [vmem:[#allocation2 + $0xc0] sm:$0xff]  ;;  %v403_v2 = vld [vmem:[#allocation2 + $0xf0] sm:$0xff]  ;;  %v404_v3 = vld [vmem:[#allocation2 + $0xf8] sm:$0xff] }
  0x61   : > { %v8380_v36 = vpack.c.bf16 %v400_v57, %v399_v56  ;;  %v8388_v30 = vpack.c.bf16 %v404_v3, %v403_v2  ;;  %v407_v56 = vld [vmem:[#allocation2 + $0x120] sm:$0xff]  ;;  %v408_v57 = vld [vmem:[#allocation2 + $0x128] sm:$0xff]  ;;  %v411_v2 = vld [vmem:[#allocation2 + $0x150] sm:$0xff] }
  0x62   : > { %v8396_v29 = vpack.c.bf16 %v408_v57, %v407_v56  ;;  %v412_v3 = vld [vmem:[#allocation2 + $0x158] sm:$0xff]  ;;  %v413_v56 = vld [vmem:[#allocation2 + $0x168] sm:$0xff]  ;;  %v414_v57 = vld [vmem:[#allocation2 + $0x170] sm:$0xff] }
  0x66   : > { %6683 = vmatmul.mubr.msk.bf16.gmra.mrb[12].mxu0 %vm258_vm1, %v8308_v60 }
  0x67   : > { %6686 = vmatprep.mubr.msk.bf16.mxu0 %vm258_vm1, %v8310_v61 }
  0x6e   : > { %6687 = vmatmul.mubr.msk.bf16.gmra.mrb[16].mxu0 %vm258_vm1, %v8316_v7 }
  0x6f   : > { %6690 = vmatprep.mubr.msk.bf16.mxu0 %vm258_vm1, %v8318_v8 }
  0x76   : > { %6691 = vmatmul.mubr.msk.bf16.gmra.mrb[20].mxu0 %vm258_vm1, %v8324_v51 }
  0x77   : > { %6694 = vmatprep.mubr.msk.bf16.mxu0 %vm258_vm1, %v8326_v50 }
  0x7e   : > { %6695 = vmatmul.mubr.msk.bf16.gmra.mrb[24].mxu0 %vm258_vm1, %v8332_v47 }
  0x7f   : > { %6698 = vmatprep.mubr.msk.bf16.mxu0 %vm258_vm1, %v8334_v49 }
  0x86   : > { %6699 = vmatmul.mubr.msk.bf16.gmra.mrb[28].mxu0 %vm258_vm1, %v8340_v46 }
  0x87   : > { %6704 = vmatprep.mubr.msk.bf16.mxu0 %vm258_vm1, %v415_v48  ;;  %v389_v48 = vld [vmem:[#allocation2 + $0x48] sm:$0xff] }
  0x88   : > { %v8362_v59 = vpack.c.bf16 %v390_v54, %v389_v48  ;;  %v397_v48 = vld [vmem:[#allocation2 + $0xa8] sm:$0xff]  ;;  %v398_v54 = vld [vmem:[#allocation2 + $0xb0] sm:$0xff] }
  0x89   : > { %v8378_v41 = vpack.c.bf16 %v398_v54, %v397_v48  ;;  %v405_v48 = vld [vmem:[#allocation2 + $0x108] sm:$0xff]  ;;  %v406_v54 = vld [vmem:[#allocation2 + $0x110] sm:$0xff] }
  0x8a   : > { %v8394_v35 = vpack.c.bf16 %v406_v54, %v405_v48  ;;  %v9472_v48 = vunpack.c.h.bf16 %v8403_v31  ;;  %v8409_v54 = vpack.c.bf16 %v412_v3, %v411_v2  ;;  %v8421_v2 = vpack.c.bf16 %v414_v57, %v413_v56  ;;  %v6038_v56 = vld [vmem:[%s9446_s1 + $0x8] sm:$0x3]  ;;  %v913_v57 = vld [vmem:[#allocation2 + $0x4a] sm:$0xff] }
  0x8c   : > { %378 = vst.msk [vmem:[#allocation2 + $0x189] sm:$0xff] %vm258_vm1, %v9472_v48  ;;  %v910_v48 = vld [vmem:[#allocation2 + $0x22] sm:$0xff] }
  0x8d   : > { %v8426_v16 = vpack.c.bf16 %v910_v48, %v909_v28  ;;  %v915_v28 = vld [vmem:[#allocation2 + $0x62] sm:$0xff]  ;;  %v916_v48 = vld [vmem:[#allocation2 + $0x6a] sm:$0xff] }
  0x8e   : > { %6705 = vmatmul.mubr.msk.bf16.vlgmr.msra.gmra.mrb[0].mxu0 %vm258_vm1, %v8345_v43  ;;  %v8442_v24 = vpack.c.bf16 %v916_v48, %v915_v28  ;;  %v923_v28 = vld [vmem:[#allocation2 + $0xc2] sm:$0xff]  ;;  %v924_v48 = vld [vmem:[#allocation2 + $0xca] sm:$0xff] }
  0x8f   : > { %6737 = vmatpush3.bf16.msra.mxu0 %v1006_v42  ;;  %6708 = vmatprep.mubr.msk.bf16.mxu0 %vm258_vm1, %v8347_v45  ;;  %v393_v42 = vld [vmem:[#allocation2 + $0x78] sm:$0xff]  ;;  %v8458_v9 = vpack.c.bf16 %v924_v48, %v923_v28  ;;  %v931_v28 = vld [vmem:[#allocation2 + $0x122] sm:$0xff]  ;;  %v932_v48 = vld [vmem:[#allocation2 + $0x12a] sm:$0xff] }
  0x90   : > { %7795 = vmatprep.subr.msk.bf16.mxu0 %vm530_vm0, %v8354_v53  ;;  %v8370_v44 = vpack.c.bf16 %v394_v63, %v393_v42  ;;  %v401_v42 = vld [vmem:[#allocation2 + $0xd8] sm:$0xff]  ;;  %v402_v63 = vld [vmem:[#allocation2 + $0xe0] sm:$0xff]  ;;  %v8474_v34 = vpack.c.bf16 %v932_v48, %v931_v28  ;;  %v1594_v48 = vsel %vm530_vm0, %v6038_v56, 0 }
  0x91   : > { %v8386_v38 = vpack.c.bf16 %v402_v63, %v401_v42  ;;  %v409_v42 = vld [vmem:[#allocation2 + $0x138] sm:$0xff]  ;;  %v410_v63 = vld [vmem:[#allocation2 + $0x140] sm:$0xff] }
  0x92   : > { %v8405_v23 = vpack.c.bf16 %v410_v63, %v409_v42  ;;  %v907_v42 = vld [vmem:[#allocation2 + $0x2] sm:$0xff]  ;;  %v908_v63 = vld [vmem:[#allocation2 + $0xa] sm:$0xff] }
  0x93   : > { %v939_v3 = vpack.c.bf16 %v908_v63, %v907_v42  ;;  %v914_v42 = vld [vmem:[#allocation2 + $0x52] sm:$0xff]  ;;  %v918_v53 = vld [vmem:[#allocation2 + $0x82] sm:$0xff] }
  0x94   : > { %v8440_v22 = vpack.c.bf16 %v914_v42, %v913_v57  ;;  %v919_v63 = vld [vmem:[#allocation2 + $0x92] sm:$0xff]  ;;  %v921_v57 = vld [vmem:[#allocation2 + $0xaa] sm:$0xff] }
  0x95   : > { %v922_v42 = vld [vmem:[#allocation2 + $0xb2] sm:$0xff] }
  0x96   : > { %6709 = vmatmul.mubr.msk.bf16.gmra.mrb[4].mxu0 %vm258_vm1, %v8362_v59  ;;  %v8456_v12 = vpack.c.bf16 %v922_v42, %v921_v57  ;;  %v929_v57 = vld [vmem:[#allocation2 + $0x10a] sm:$0xff]  ;;  %v930_v42 = vld [vmem:[#allocation2 + $0x112] sm:$0xff] }
  0x97   : > { %6712 = vmatprep.mubr.msk.bf16.mxu0 %vm258_vm1, %v8364_v62  ;;  %v8472_v31 = vpack.c.bf16 %v930_v42, %v929_v57  ;;  %v937_v57 = vld [vmem:[#allocation2 + $0x16a] sm:$0xff]  ;;  %v938_v42 = vld [vmem:[#allocation2 + $0x172] sm:$0xff] }
  0x98   : > { %v8488_v28 = vpack.c.bf16 %v938_v42, %v937_v57  ;;  %v6106_v42 = vld [vmem:[%s9446_s1 + $0x10] sm:$0x3] }
  0x9e   : > { %6713 = vmatmul.mubr.msk.bf16.gmra.mrb[8].mxu0 %vm258_vm1, %v8370_v44 }
  0x9f   : > { %6716 = vmatprep.mubr.msk.bf16.mxu0 %vm258_vm1, %v8372_v37 }
  0xa6   : > { %6717 = vmatmul.mubr.msk.bf16.gmra.mrb[12].mxu0 %vm258_vm1, %v8378_v41 }
  0xa7   : > { %6720 = vmatprep.mubr.msk.bf16.mxu0 %vm258_vm1, %v8380_v36 }
  0xae   : > { %6721 = vmatmul.mubr.msk.bf16.gmra.mrb[16].mxu0 %vm258_vm1, %v8386_v38 }
  0xaf   : > { %6724 = vmatprep.mubr.msk.bf16.mxu0 %vm258_vm1, %v8388_v30 }
  0xb6   : > { %6725 = vmatmul.mubr.msk.bf16.gmra.mrb[20].mxu0 %vm258_vm1, %v8394_v35 }
  0xb7   : > { %6728 = vmatprep.mubr.msk.bf16.mxu0 %vm258_vm1, %v8396_v29 }
  0xbe   : > { %6729 = vmatmul.mubr.msk.bf16.gmra.mrb[24].mxu0 %vm258_vm1, %v8405_v23 }
  0xbf   : > { %6732 = vmatprep.mubr.msk.bf16.mxu0 %vm258_vm1, %v8409_v54 }
  0xc6   : > { %6733 = vmatmul.mubr.msk.bf16.gmra.mrb[28].mxu0 %vm258_vm1, %v8421_v2 }
  0xc7   : > { %6738 = vmatprep.mubr.msk.bf16.mxu0 %vm258_vm1, %v939_v3  ;;  %v920_v3 = vld [vmem:[#allocation2 + $0x9a] sm:$0xff] }
  0xc8   : > { %v8450_v10 = vpack.c.bf16 %v920_v3, %v919_v63  ;;  %v927_v63 = vld [vmem:[#allocation2 + $0xf2] sm:$0xff]  ;;  %v928_v3 = vld [vmem:[#allocation2 + $0xfa] sm:$0xff] }
  0xc9   : > { %v8466_v40 = vpack.c.bf16 %v928_v3, %v927_v63  ;;  %v935_v63 = vld [vmem:[#allocation2 + $0x152] sm:$0xff]  ;;  %v936_v3 = vld [vmem:[#allocation2 + $0x15a] sm:$0xff] }
  0xca   : > { %v8482_v32 = vpack.c.bf16 %v936_v3, %v935_v63  ;;  %v6072_v3 = vld [vmem:[%s9446_s1 + $0xc] sm:$0x3] }
  0xce   : > { %6739 = vmatmul.mubr.msk.bf16.vlgmr.msra.gmra.mrb[0].mxu0 %vm258_vm1, %v8426_v16 }
  0xcf   : > { %6771 = vmatpush3.bf16.msra.mxu0 %v1300_v15  ;;  %6742 = vmatprep.mubr.msk.bf16.mxu0 %vm258_vm1, %v8428_v21  ;;  %v917_v15 = vld [vmem:[#allocation2 + $0x7a] sm:$0xff] }
  0xd0   : > { %7796 = vmatprep.subr.msk.bf16.mxu0 %vm530_vm0, %v6038_v56  ;;  %v8448_v17 = vpack.c.bf16 %v918_v53, %v917_v15  ;;  %v925_v15 = vld [vmem:[#allocation2 + $0xda] sm:$0xff]  ;;  %v926_v53 = vld [vmem:[#allocation2 + $0xe2] sm:$0xff] }
  0xd1   : > { %v8464_v11 = vpack.c.bf16 %v926_v53, %v925_v15  ;;  %v933_v15 = vld [vmem:[#allocation2 + $0x13a] sm:$0xff]  ;;  %v934_v53 = vld [vmem:[#allocation2 + $0x142] sm:$0xff] }
  0xd2   : > { %v8480_v39 = vpack.c.bf16 %v934_v53, %v933_v15  ;;  %v6055_v15 = vld [vmem:[%s9446_s1 + $0xa] sm:$0x3] }
  0xd3   : > { %v1232_v56 = vld [vmem:[#allocation2 + $0x188] sm:$0xff]  ;;  %v1888_v63 = vsel %vm530_vm0, %v6055_v15, 0 }
  0xd6   : > { %6743 = vmatmul.mubr.msk.bf16.gmra.mrb[4].mxu0 %vm258_vm1, %v8440_v22 }
  0xd7   : > { %6746 = vmatprep.mubr.msk.bf16.mxu0 %vm258_vm1, %v8442_v24 }
  0xde   : > { %6747 = vmatmul.mubr.msk.bf16.gmra.mrb[8].mxu0 %vm258_vm1, %v8448_v17 }
  0xdf   : > { %6750 = vmatprep.mubr.msk.bf16.mxu0 %vm258_vm1, %v8450_v10 }
  0xe6   : > { %6751 = vmatmul.mubr.msk.bf16.gmra.mrb[12].mxu0 %vm258_vm1, %v8456_v12 }
  0xe7   : > { %6754 = vmatprep.mubr.msk.bf16.mxu0 %vm258_vm1, %v8458_v9 }
  0xee   : > { %6755 = vmatmul.mubr.msk.bf16.gmra.mrb[16].mxu0 %vm258_vm1, %v8464_v11 }
  0xef   : > { %6758 = vmatprep.mubr.msk.bf16.mxu0 %vm258_vm1, %v8466_v40 }
  0xf6   : > { %6759 = vmatmul.mubr.msk.bf16.gmra.mrb[20].mxu0 %vm258_vm1, %v8472_v31 }
  0xf7   : > { %6762 = vmatprep.mubr.msk.bf16.mxu0 %vm258_vm1, %v8474_v34 }
  0xfe   : > { %6763 = vmatmul.mubr.msk.bf16.gmra.mrb[24].mxu0 %vm258_vm1, %v8480_v39 }
  0xff   : > { %6766 = vmatprep.mubr.msk.bf16.mxu0 %vm258_vm1, %v8482_v32 }
 0x106   : > { %6767 = vmatmul.mubr.msk.bf16.gmra.mrb[28].mxu0 %vm258_vm1, %v8488_v28 }
 0x107   : > { %6772 = vmatprep.mubr.msk.bf16.mxu0 %vm258_vm1, %v8345_v43  ;;  %v1231_v43 = vld [vmem:[#allocation2 + $0x180] sm:$0xff] }
 0x108   : > { %v8527_v53 = vpack.c.bf16 %v1232_v56, %v1231_v43  ;;  %v2387_v43 = vld [vmem:[#allocation2 + $0x99] sm:$0xff] }
 0x10e   : > { %6773 = vmatmul.mubr.msk.bf16.vlgmr.msra.gmra.mrb[0].mxu0 %vm258_vm1, %v8347_v45 }
 0x10f   : > { %6805 = vmatpush3.bf16.msra.mxu0 %v1594_v48  ;;  %6776 = vmatprep.mubr.msk.bf16.mxu0 %vm258_vm1, %v8362_v59  ;;  %v2385_v48 = vld [vmem:[#allocation2 + $0x81] sm:$0xff] }
 0x110   : > { %7797 = vmatprep.subr.msk.bf16.mxu0 %vm530_vm0, %v6055_v15  ;;  %v2386_v15 = vld [vmem:[#allocation2 + $0x91] sm:$0xff] }
 0x116   : > { %6777 = vmatmul.mubr.msk.bf16.gmra.mrb[4].mxu0 %vm258_vm1, %v8364_v62 }
 0x117   : > { %6780 = vmatprep.mubr.msk.bf16.mxu0 %vm258_vm1, %v8370_v44 }
 0x11e   : > { %6781 = vmatmul.mubr.msk.bf16.gmra.mrb[8].mxu0 %vm258_vm1, %v8372_v37 }
 0x11f   : > { %6784 = vmatprep.mubr.msk.bf16.mxu0 %vm258_vm1, %v8378_v41 }
 0x126   : > { %6785 = vmatmul.mubr.msk.bf16.gmra.mrb[12].mxu0 %vm258_vm1, %v8380_v36 }
 0x127   : > { %6788 = vmatprep.mubr.msk.bf16.mxu0 %vm258_vm1, %v8386_v38 }
 0x12e   : > { %6789 = vmatmul.mubr.msk.bf16.gmra.mrb[16].mxu0 %vm258_vm1, %v8388_v30 }
 0x12f   : > { %6792 = vmatprep.mubr.msk.bf16.mxu0 %vm258_vm1, %v8394_v35 }
 0x136   : > { %6793 = vmatmul.mubr.msk.bf16.gmra.mrb[20].mxu0 %vm258_vm1, %v8396_v29 }
 0x137   : > { %6796 = vmatprep.mubr.msk.bf16.mxu0 %vm258_vm1, %v8405_v23 }
 0x13e   : > { %6797 = vmatmul.mubr.msk.bf16.gmra.mrb[24].mxu0 %vm258_vm1, %v8409_v54 }
 0x13f   : > { %6800 = vmatprep.mubr.msk.bf16.mxu0 %vm258_vm1, %v8421_v2 }
 0x146   : > { %6801 = vmatmul.mubr.msk.bf16.gmra.mrb[28].mxu0 %vm258_vm1, %v8527_v53 }
 0x147   : > { %6806 = vmatprep.mubr.msk.bf16.mxu0 %vm258_vm1, %v8275_v55  ;;  %v1525_v55 = vld [vmem:[#allocation2 + $0x181] sm:$0xff] }
 0x14e   : > { %6807 = vmatmul.mubr.msk.bf16.vlgmr.msra.gmra.mrb[0].mxu0 %vm258_vm1, %v8279_v58  ;;  %v1526_v58 = vld [vmem:[#allocation2 + $0x189] sm:$0xff] }
 0x14f   : > { %6839 = vmatpush3.bf16.msra.mxu0 %v1888_v63  ;;  %6810 = vmatprep.mubr.msk.bf16.mxu0 %vm258_vm1, %v8292_v0  ;;  %v8566_v0 = vpack.c.bf16 %v1526_v58, %v1525_v55  ;;  %v2388_v63 = vld [vmem:[#allocation2 + $0xa9] sm:$0xff] }
 0x150   : > { %7798 = vmatprep.subr.msk.bf16.mxu0 %vm530_vm0, %v6072_v3 }
 0x156   : > { %6811 = vmatmul.mubr.msk.bf16.gmra.mrb[4].mxu0 %vm258_vm1, %v8294_v1  ;;  %v2183_v1 = vsel %vm530_vm0, %v6072_v3, 0  ;;  %v2389_v3 = vld [vmem:[#allocation2 + $0xb1] sm:$0xff] }
 0x157   : > { %6814 = vmatprep.mubr.msk.bf16.mxu0 %vm258_vm1, %v8300_v14  ;;  %v6089_v14 = vld [vmem:[%s9446_s1 + $0xe] sm:$0x3]  ;;  %v2415_v55 = vpack.c.bf16 %v2389_v3, %v2388_v63 }
 0x158   : > { %v2477_v57 = vsel %vm530_vm0, %v6089_v14, 0 }
 0x15e   : > { %6815 = vmatmul.mubr.msk.bf16.gmra.mrb[8].mxu0 %vm258_vm1, %v8302_v52  ;;  %v1820_v52 = vld [vmem:[#allocation2 + $0x18a] sm:$0xff] }
 0x15f   : > { %6818 = vmatprep.mubr.msk.bf16.mxu0 %vm258_vm1, %v8308_v60 }
 0x166   : > { %6819 = vmatmul.mubr.msk.bf16.gmra.mrb[12].mxu0 %vm258_vm1, %v8310_v61 }
 0x167   : > { %6822 = vmatprep.mubr.msk.bf16.mxu0 %vm258_vm1, %v8316_v7 }
 0x16e   : > { %6823 = vmatmul.mubr.msk.bf16.gmra.mrb[16].mxu0 %vm258_vm1, %v8318_v8 }
 0x16f   : > { %6826 = vmatprep.mubr.msk.bf16.mxu0 %vm258_vm1, %v8324_v51 }
 0x176   : > { %6827 = vmatmul.mubr.msk.bf16.gmra.mrb[20].mxu0 %vm258_vm1, %v8326_v50 }
 0x177   : > { %6830 = vmatprep.mubr.msk.bf16.mxu0 %vm258_vm1, %v8332_v47 }
 0x17e   : > { %6831 = vmatmul.mubr.msk.bf16.gmra.mrb[24].mxu0 %vm258_vm1, %v8334_v49 }
 0x17f   : > { %6834 = vmatprep.mubr.msk.bf16.mxu0 %vm258_vm1, %v8340_v46 }
 0x186   : > { %6835 = vmatmul.mubr.msk.bf16.gmra.mrb[28].mxu0 %vm258_vm1, %v8566_v0 }
 0x187   : > { %6840 = vmatprep.mubr.msk.bf16.mxu0 %vm258_vm1, %v8426_v16  ;;  %v1819_v16 = vld [vmem:[#allocation2 + $0x182] sm:$0xff] }
 0x188   : > { %v8605_v60 = vpack.c.bf16 %v1820_v52, %v1819_v16 }
 0x18e   : > { %6841 = vmatmul.mubr.msk.bf16.vlgmr.msra.gmra.mrb[0].mxu0 %vm258_vm1, %v8428_v21 }
 0x18f   : > { %6873 = vmatpush3.bf16.msra.mxu0 %v2183_v1  ;;  %6844 = vmatprep.mubr.msk.bf16.mxu0 %vm258_vm1, %v8440_v22 }
 0x190   : > { %7799 = vmatprep.subr.msk.bf16.mxu0 %vm530_vm0, %v6089_v14 }
 0x196   : > { %6845 = vmatmul.mubr.msk.bf16.gmra.mrb[4].mxu0 %vm258_vm1, %v8442_v24 }
 0x197   : > { %6848 = vmatprep.mubr.msk.bf16.mxu0 %vm258_vm1, %v8448_v17 }
 0x19e   : > { %6849 = vmatmul.mubr.msk.bf16.gmra.mrb[8].mxu0 %vm258_vm1, %v8450_v10 }
 0x19f   : > { %6852 = vmatprep.mubr.msk.bf16.mxu0 %vm258_vm1, %v8456_v12 }
 0x1a6   : > { %6853 = vmatmul.mubr.msk.bf16.gmra.mrb[12].mxu0 %vm258_vm1, %v8458_v9 }
 0x1a7   : > { %6856 = vmatprep.mubr.msk.bf16.mxu0 %vm258_vm1, %v8464_v11 }
 0x1ae   : > { %6857 = vmatmul.mubr.msk.bf16.gmra.mrb[16].mxu0 %vm258_vm1, %v8466_v40 }
 0x1af   : > { %6860 = vmatprep.mubr.msk.bf16.mxu0 %vm258_vm1, %v8472_v31 }
 0x1b6   : > { %6861 = vmatmul.mubr.msk.bf16.gmra.mrb[20].mxu0 %vm258_vm1, %v8474_v34 }
 0x1b7   : > { %6864 = vmatprep.mubr.msk.bf16.mxu0 %vm258_vm1, %v8480_v39 }
 0x1be   : > { %6865 = vmatmul.mubr.msk.bf16.gmra.mrb[24].mxu0 %vm258_vm1, %v8482_v32 }
 0x1bf   : > { %6868 = vmatprep.mubr.msk.bf16.mxu0 %vm258_vm1, %v8488_v28 }
 0x1c6   : > { %6869 = vmatmul.mubr.msk.bf16.gmra.mrb[28].mxu0 %vm258_vm1, %v8605_v60 }
 0x1c7   : > { %6874 = vmatprep.mubr.msk.bf16.mxu0 %vm258_vm1, %v8347_v45  ;;  %v2383_v45 = vld [vmem:[#allocation2 + $0x69] sm:$0xff] }
 0x1ce   : > { %6875 = vmatmul.mubr.msk.bf16.vlgmr.msra.gmra.mrb[0].mxu0 %vm258_vm1, %v8362_v59 }
 0x1cf   : > { %6907 = vmatpush3.bf16.msra.mxu0 %v2477_v57  ;;  %6878 = vmatprep.mubr.msk.bf16.mxu0 %vm258_vm1, %v8364_v62 }
 0x1d0   : > { %7800 = vmatprep.subr.msk.bf16.mxu0 %vm530_vm0, %v6106_v42 }
 0x1d6   : > { %6879 = vmatmul.mubr.msk.bf16.gmra.mrb[4].mxu0 %vm258_vm1, %v8370_v44  ;;  %v2382_v44 = vld [vmem:[#allocation2 + $0x61] sm:$0xff] }
 0x1d7   : > { %6882 = vmatprep.mubr.msk.bf16.mxu0 %vm258_vm1, %v8372_v37  ;;  %v2378_v37 = vld [vmem:[#allocation2 + $0x31] sm:$0xff]  ;;  %v2412_v62 = vpack.c.bf16 %v2383_v45, %v2382_v44 }
 0x1de   : > { %6883 = vmatmul.mubr.msk.bf16.gmra.mrb[8].mxu0 %vm258_vm1, %v8378_v41 }
 0x1df   : > { %6886 = vmatprep.mubr.msk.bf16.mxu0 %vm258_vm1, %v8380_v36  ;;  %v2114_v36 = vld [vmem:[#allocation2 + $0x198] sm:$0xff] }
 0x1e6   : > { %6887 = vmatmul.mubr.msk.bf16.gmra.mrb[12].mxu0 %vm258_vm1, %v8386_v38  ;;  %v2379_v38 = vld [vmem:[#allocation2 + $0x39] sm:$0xff] }
 0x1e7   : > { %6890 = vmatprep.mubr.msk.bf16.mxu0 %vm258_vm1, %v8388_v30  ;;  %v2115_v30 = vld [vmem:[#allocation2 + $0x1a0] sm:$0xff]  ;;  %v2410_v41 = vpack.c.bf16 %v2379_v38, %v2378_v37 }
 0x1ee   : > { %6891 = vmatmul.mubr.msk.bf16.gmra.mrb[16].mxu0 %vm258_vm1, %v8394_v35  ;;  %v2131_v35 = vpack.c.bf16 %v2115_v30, %v2114_v36 }
 0x1ef   : > { %6894 = vmatprep.mubr.msk.bf16.mxu0 %vm258_vm1, %v8396_v29  ;;  %v2381_v29 = vld [vmem:[#allocation2 + $0x51] sm:$0xff] }
 0x1f6   : > { %6895 = vmatmul.mubr.msk.bf16.gmra.mrb[20].mxu0 %vm258_vm1, %v8405_v23  ;;  %v2380_v23 = vld [vmem:[#allocation2 + $0x49] sm:$0xff] }
 0x1f7   : > { %6898 = vmatprep.mubr.msk.bf16.mxu0 %vm258_vm1, %v8409_v54  ;;  %v2411_v59 = vpack.c.bf16 %v2381_v29, %v2380_v23  ;;  %v2771_v54 = vsel %vm530_vm0, %v6106_v42, 0 }
 0x1fe   : > { %6899 = vmatmul.mubr.msk.bf16.gmra.mrb[24].mxu0 %vm258_vm1, %v8421_v2  ;;  %v2384_v2 = vld [vmem:[#allocation2 + $0x79] sm:$0xff] }
 0x1ff   : > { %6902 = vmatprep.mubr.msk.bf16.mxu0 %vm258_vm1, %v8527_v53  ;;  %v2413_v56 = vpack.c.bf16 %v2385_v48, %v2384_v2  ;;  %v2414_v53 = vpack.c.bf16 %v2387_v43, %v2386_v15 }
 0x206   : > { %6903 = vmatmul.mubr.msk.bf16.gmra.mrb[28].mxu0 %vm258_vm1, %v2131_v35 }
 0x207   : > { %6908 = vmatprep.mubr.msk.bf16.mxu0 %vm258_vm1, %v2410_v41 }
 0x20e   : > { %6909 = vmatmul.mubr.msk.bf16.vlgmr.msra.gmra.mrb[0].mxu0 %vm258_vm1, %v2411_v59 }
 0x20f   : > { %6941 = vmatpush3.bf16.msra.mxu0 %v2771_v54  ;;  %6912 = vmatprep.mubr.msk.bf16.mxu0 %vm258_vm1, %v2412_v62 }
 0x216   : > { %6913 = vmatmul.mubr.msk.bf16.gmra.mrb[4].mxu0 %vm258_vm1, %v2413_v56 }
 0x217   : > { %6916 = vmatprep.mubr.msk.bf16.mxu0 %vm258_vm1, %v2414_v53 }
 0x21e   : > { %6917 = vmatmul.mubr.msk.bf16.gmra.mrb[8].mxu0 %vm258_vm1, %v2415_v55 }
 0x21f   : > { %6920 = vmatprep.mubr.msk.bf16.mxu0 %vm258_vm1, %v8310_v61  ;;  %v2408_v61 = vld [vmem:[#allocation2 + $0x199] sm:$0xff] }
 0x226   : > { %6921 = vmatmul.mubr.msk.bf16.gmra.mrb[12].mxu0 %vm258_vm1, %v8316_v7  ;;  %v2409_v7 = vld [vmem:[#allocation2 + $0x1a1] sm:$0xff] }
 0x227   : > { %6924 = vmatprep.mubr.msk.bf16.mxu0 %vm258_vm1, %v8318_v8  ;;  %v2425_v8 = vpack.c.bf16 %v2409_v7, %v2408_v61 }
 0x22e   : > { %6925 = vmatmul.mubr.msk.bf16.gmra.mrb[16].mxu0 %vm258_vm1, %v8324_v51 }
 0x22f   : > { %6928 = vmatprep.mubr.msk.bf16.mxu0 %vm258_vm1, %v8326_v50 }
 0x236   : > { %6929 = vmatmul.mubr.msk.bf16.gmra.mrb[20].mxu0 %vm258_vm1, %v8332_v47 }
 0x237   : > { %6932 = vmatprep.mubr.msk.bf16.mxu0 %vm258_vm1, %v8334_v49 }
 0x23e   : > { %6933 = vmatmul.mubr.msk.bf16.gmra.mrb[24].mxu0 %vm258_vm1, %v8340_v46 }
 0x23f   : > { %6936 = vmatprep.mubr.msk.bf16.mxu0 %vm258_vm1, %v8566_v0 }
 0x246   : > { %6937 = vmatmul.mubr.msk.bf16.gmra.mrb[28].mxu0 %vm258_vm1, %v2425_v8 }
 0x247   : > { %6942 = vmatprep.mubr.msk.bf16.mxu0 %vm258_vm1, %v8428_v21  ;;  %v3206_v21 = vld [vmem:[#allocation3 + $0x1] sm:$0xff] }
 0x24e   : > { %6943 = vmatmul.mubr.msk.bf16.vlgmr.msra.gmra.mrb[0].mxu0 %vm258_vm1, %v8440_v22 }
 0x24f   : > { %6946 = vmatprep.mubr.msk.bf16.mxu0 %vm258_vm1, %v8442_v24 }
 0x256   : > { %6947 = vmatmul.mubr.msk.bf16.gmra.mrb[4].mxu0 %vm258_vm1, %v8448_v17 }
 0x257   : > { %6950 = vmatprep.mubr.msk.bf16.mxu0 %vm258_vm1, %v8450_v10  ;;  %v2703_v10 = vld [vmem:[#allocation2 + $0x1a2] sm:$0xff] }
 0x25e   : > { %6951 = vmatmul.mubr.msk.bf16.gmra.mrb[8].mxu0 %vm258_vm1, %v8456_v12  ;;  %v6125_v12 = vld [vmem:[%s9447_s2 + $0x2] sm:$0x3] }
 0x25f   : > { %6954 = vmatprep.mubr.msk.bf16.mxu0 %vm258_vm1, %v8458_v9  ;;  %v2702_v9 = vld [vmem:[#allocation2 + $0x19a] sm:$0xff]  ;;  %7801 = vmatprep.subr.msk.bf16.mxu1 %vm530_vm0, %v6125_v12  ;;  %v3305_v17 = vsel %vm530_vm0, %v6125_v12, 0 }
 0x260   : > { %6975 = vmatpush3.bf16.msra.mxu1 %v3305_v17 }
 0x266   : > { %6955 = vmatmul.mubr.msk.bf16.gmra.mrb[12].mxu0 %vm258_vm1, %v8464_v11  ;;  %v2719_v11 = vpack.c.bf16 %v2703_v10, %v2702_v9 }
 0x267   : > { %6958 = vmatprep.mubr.msk.bf16.mxu0 %vm258_vm1, %v8466_v40  ;;  %v8720_v40 = vld [vmem:[%s9448_s3 + $0x1] ss:$0 sm:$0xff] }
 0x26e   : > { %6959 = vmatmul.mubr.msk.bf16.gmra.mrb[16].mxu0 %vm258_vm1, %v8472_v31  ;;  %v3207_v31 = vld [vmem:[#allocation3 + $0x9] sm:$0xff] }
 0x26f   : > { %6962 = vmatprep.mubr.msk.bf16.mxu0 %vm258_vm1, %v8474_v34  ;;  %v3205_v34 = vld [vmem:[%s9447_s2] sm:$0x3] }
 0x270   : > { %7802 = vmatprep.subr.msk.bf16.mxu1 %vm530_vm0, %v3205_v34  ;;  %v3517_v8 = vsel %vm530_vm0, %v3205_v34, 0 }
 0x276   : > { %6963 = vmatmul.mubr.msk.bf16.gmra.mrb[20].mxu0 %vm258_vm1, %v8480_v39  ;;  %v8715_v39 = vld [vmem:[%s9448_s3] ss:$0 sm:$0xff] }
 0x277   : > { %6966 = vmatprep.mubr.msk.bf16.mxu0 %vm258_vm1, %v8482_v32  ;;  %v3238_v32 = vpack.c.bf16 %v3207_v31, %v3206_v21  ;;  %v8758_v21 = vld [vmem:[%s9447_s2 + $0x4] sm:$0x3] }
 0x279   : > { %6976 = vmatprep.mubr.msk.bf16.mxu1 %vm258_vm1, %v3238_v32 }
 0x27e   : > { %6967 = vmatmul.mubr.msk.bf16.gmra.mrb[24].mxu0 %vm258_vm1, %v8488_v28 }
 0x27f   : > { %6970 = vmatprep.mubr.msk.bf16.mxu0 %vm258_vm1, %v8605_v60 }
 0x286   : > { %6971 = vmatmul.mubr.msk.bf16.gmra.mrb[28].mxu0 %vm258_vm1, %v2719_v11 }
 0x321   : > { %v6944_v46 = vpop.f32.mrb[0].mxu0 }
 0x322   : > { %v2972_v47 = vmul.f32 %v6944_v46, %v8715_v39  ;;  %v2807_v49 = vpop.f32.mrb[1].mxu0 }
 0x323   : > { %v2970_v50 = vmul.f32 %v8715_v39, %v2807_v49  ;;  %v6945_v51 = vpop.f32.mrb[2].mxu0 }
 0x324   : > { %v3008_v22 = vadd.f32 %v8720_v40, %v2972_v47  ;;  %v2973_v24 = vmul.f32 %v6945_v51, %v8715_v39  ;;  %v2810_v28 = vpop.f32.mrb[3].mxu0 }
 0x325   : > { %v3006_v58 = vadd.f32 %v8720_v40, %v2970_v50  ;;  %v2971_v0 = vmul.f32 %v8715_v39, %v2810_v28 }
 0x326   : > { %v3040_v1 = vmax.f32 %v3008_v22, 0.0  ;;  %v3009_v14 = vadd.f32 %v8720_v40, %v2973_v24 }
 0x327   : > { %v3038_v16 = vmax.f32 %v3006_v58, 0.0  ;;  %v3007_v52 = vadd.f32 %v8720_v40, %v2971_v0 }
 0x328   : > { %3127 = vst.msk [vmem:[#allocation3 + $0x31] sm:$0xff] %vm258_vm1, %v3040_v1  ;;  %v3041_v60 = vmax.f32 %v3009_v14, 0.0 }
 0x329   : > { %3125 = vst.msk [vmem:[#allocation3 + $0x19] sm:$0xff] %vm258_vm1, %v3038_v16  ;;  %v3039_v57 = vmax.f32 %v3007_v52, 0.0  ;;  %v6948_v42 = vpop.f32.mrb[4].mxu0 }
 0x32a   : > { %3128 = vst.msk [vmem:[#allocation3 + $0x39] sm:$0xff] %vm258_vm1, %v3041_v60  ;;  %v2976_v36 = vmul.f32 %v6948_v42, %v8715_v39  ;;  %v2823_v30 = vpop.f32.mrb[5].mxu0 }
 0x32b   : > { %3126 = vst.msk [vmem:[#allocation3 + $0x21] sm:$0xff] %vm258_vm1, %v3039_v57  ;;  %v2974_v37 = vmul.f32 %v8715_v39, %v2823_v30  ;;  %v6949_v38 = vpop.f32.mrb[6].mxu0 }
 0x32c   : > { %v3012_v35 = vadd.f32 %v8720_v40, %v2976_v36  ;;  %v2977_v41 = vmul.f32 %v6949_v38, %v8715_v39  ;;  %v2826_v23 = vpop.f32.mrb[7].mxu0 }
 0x32d   : > { %v3010_v29 = vadd.f32 %v8720_v40, %v2974_v37  ;;  %v2975_v44 = vmul.f32 %v8715_v39, %v2826_v23 }
 0x32e   : > { %v3044_v45 = vmax.f32 %v3012_v35, 0.0  ;;  %v3013_v59 = vadd.f32 %v8720_v40, %v2977_v41 }
 0x32f   : > { %v3042_v62 = vmax.f32 %v3010_v29, 0.0  ;;  %v3011_v54 = vadd.f32 %v8720_v40, %v2975_v44  ;;  %v3210_v9 = vld [vmem:[#allocation3 + $0x31] sm:$0xff] }
 0x330   : > { %3131 = vst.msk [vmem:[#allocation3 + $0x61] sm:$0xff] %vm258_vm1, %v3044_v45  ;;  %v3045_v2 = vmax.f32 %v3013_v59, 0.0  ;;  %v3208_v63 = vld [vmem:[#allocation3 + $0x19] sm:$0xff] }
 0x331   : > { %3129 = vst.msk [vmem:[#allocation3 + $0x49] sm:$0xff] %vm258_vm1, %v3042_v62  ;;  %v3043_v48 = vmax.f32 %v3011_v54, 0.0  ;;  %v6952_v15 = vpop.f32.mrb[8].mxu0  ;;  %v3211_v43 = vld [vmem:[#allocation3 + $0x39] sm:$0xff] }
 0x332   : > { %3132 = vst.msk [vmem:[#allocation3 + $0x69] sm:$0xff] %vm258_vm1, %v3045_v2  ;;  %v2980_v56 = vmul.f32 %v6952_v15, %v8715_v39  ;;  %v2839_v53 = vpop.f32.mrb[9].mxu0  ;;  %v3209_v3 = vld [vmem:[#allocation3 + $0x21] sm:$0xff]  ;;  %v8753_v17 = vpack.c.bf16 %v3211_v43, %v3210_v9 }
 0x333   : > { %3130 = vst.msk [vmem:[#allocation3 + $0x51] sm:$0xff] %vm258_vm1, %v3043_v48  ;;  %v2978_v55 = vmul.f32 %v8715_v39, %v2839_v53  ;;  %v6953_v61 = vpop.f32.mrb[10].mxu0  ;;  %v8748_v7 = vpack.c.bf16 %v3209_v3, %v3208_v63 }
 0x334   : > { %v3016_v10 = vadd.f32 %v8720_v40, %v2980_v56  ;;  %v2981_v11 = vmul.f32 %v6953_v61, %v8715_v39  ;;  %v2842_v12 = vpop.f32.mrb[11].mxu0 }
 0x335   : > { %v3014_v31 = vadd.f32 %v8720_v40, %v2978_v55  ;;  %v2979_v32 = vmul.f32 %v8715_v39, %v2842_v12  ;;  %6977 = vmatmul.mubr.msk.bf16.vlgmr.msra.gmra.mrb[0].mxu1 %vm258_vm1, %v8748_v7 }
 0x336   : > { %v3048_v34 = vmax.f32 %v3016_v10, 0.0  ;;  %v3017_v46 = vadd.f32 %v8720_v40, %v2981_v11  ;;  %7009 = vmatpush3.bf16.msra.mxu1 %v3517_v8  ;;  %6980 = vmatprep.mubr.msk.bf16.mxu1 %vm258_vm1, %v8753_v17 }
 0x337   : > { %v3046_v47 = vmax.f32 %v3014_v31, 0.0  ;;  %v3015_v49 = vadd.f32 %v8720_v40, %v2979_v32  ;;  %7803 = vmatprep.subr.msk.bf16.mxu1 %vm530_vm0, %v8758_v21  ;;  %v3214_v60 = vld [vmem:[#allocation3 + $0x61] sm:$0xff] }
 0x338   : > { %3135 = vst.msk [vmem:[#allocation3 + $0x91] sm:$0xff] %vm258_vm1, %v3048_v34  ;;  %v3049_v50 = vmax.f32 %v3017_v46, 0.0  ;;  %v3212_v0 = vld [vmem:[#allocation3 + $0x49] sm:$0xff] }
 0x339   : > { %3133 = vst.msk [vmem:[#allocation3 + $0x79] sm:$0xff] %vm258_vm1, %v3046_v47  ;;  %v3047_v51 = vmax.f32 %v3015_v49, 0.0  ;;  %v6956_v22 = vpop.f32.mrb[12].mxu0  ;;  %v3215_v24 = vld [vmem:[#allocation3 + $0x69] sm:$0xff] }
 0x33a   : > { %3136 = vst.msk [vmem:[#allocation3 + $0x99] sm:$0xff] %vm258_vm1, %v3049_v50  ;;  %v2984_v28 = vmul.f32 %v6956_v22, %v8715_v39  ;;  %v2855_v58 = vpop.f32.mrb[13].mxu0  ;;  %v3213_v1 = vld [vmem:[#allocation3 + $0x51] sm:$0xff]  ;;  %v8780_v30 = vpack.c.bf16 %v3215_v24, %v3214_v60 }
 0x33b   : > { %3134 = vst.msk [vmem:[#allocation3 + $0x81] sm:$0xff] %vm258_vm1, %v3047_v51  ;;  %v2982_v14 = vmul.f32 %v8715_v39, %v2855_v58  ;;  %v6957_v16 = vpop.f32.mrb[14].mxu0  ;;  %v8776_v52 = vpack.c.bf16 %v3213_v1, %v3212_v0 }
 0x33c   : > { %v3020_v57 = vadd.f32 %v8720_v40, %v2984_v28  ;;  %v2985_v42 = vmul.f32 %v6957_v16, %v8715_v39  ;;  %v2858_v36 = vpop.f32.mrb[15].mxu0 }
 0x33d   : > { %v3018_v37 = vadd.f32 %v8720_v40, %v2982_v14  ;;  %v2983_v38 = vmul.f32 %v8715_v39, %v2858_v36  ;;  %6981 = vmatmul.mubr.msk.bf16.gmra.mrb[4].mxu1 %vm258_vm1, %v8776_v52 }
 0x33e   : > { %v3052_v35 = vmax.f32 %v3020_v57, 0.0  ;;  %v3021_v41 = vadd.f32 %v8720_v40, %v2985_v42  ;;  %6984 = vmatprep.mubr.msk.bf16.mxu1 %vm258_vm1, %v8780_v30 }
 0x33f   : > { %v3050_v23 = vmax.f32 %v3018_v37, 0.0  ;;  %v3019_v29 = vadd.f32 %v8720_v40, %v2983_v38  ;;  %v3218_v63 = vld [vmem:[#allocation3 + $0x91] sm:$0xff] }
 0x340   : > { %3139 = vst.msk [vmem:[#allocation3 + $0xc1] sm:$0xff] %vm258_vm1, %v3052_v35  ;;  %v3053_v44 = vmax.f32 %v3021_v41, 0.0  ;;  %v3216_v48 = vld [vmem:[#allocation3 + $0x79] sm:$0xff] }
 0x341   : > { %3137 = vst.msk [vmem:[#allocation3 + $0xa9] sm:$0xff] %vm258_vm1, %v3050_v23  ;;  %v3051_v45 = vmax.f32 %v3019_v29, 0.0  ;;  %v6960_v59 = vpop.f32.mrb[16].mxu0  ;;  %v3219_v62 = vld [vmem:[#allocation3 + $0x99] sm:$0xff] }
 0x342   : > { %3140 = vst.msk [vmem:[#allocation3 + $0xc9] sm:$0xff] %vm258_vm1, %v3053_v44  ;;  %v2988_v54 = vmul.f32 %v6960_v59, %v8715_v39  ;;  %v2871_v2 = vpop.f32.mrb[17].mxu0  ;;  %v3217_v15 = vld [vmem:[#allocation3 + $0x81] sm:$0xff]  ;;  %v8800_v8 = vpack.c.bf16 %v3219_v62, %v3218_v63 }
 0x343   : > { %3138 = vst.msk [vmem:[#allocation3 + $0xb1] sm:$0xff] %vm258_vm1, %v3051_v45  ;;  %v2986_v43 = vmul.f32 %v8715_v39, %v2871_v2  ;;  %v6961_v56 = vpop.f32.mrb[18].mxu0  ;;  %v8796_v53 = vpack.c.bf16 %v3217_v15, %v3216_v48 }
 0x344   : > { %v3024_v3 = vadd.f32 %v8720_v40, %v2988_v54  ;;  %v2989_v55 = vmul.f32 %v6961_v56, %v8715_v39  ;;  %v2874_v61 = vpop.f32.mrb[19].mxu0 }
 0x345   : > { %v3022_v9 = vadd.f32 %v8720_v40, %v2986_v43  ;;  %v2987_v10 = vmul.f32 %v8715_v39, %v2874_v61  ;;  %6985 = vmatmul.mubr.msk.bf16.gmra.mrb[8].mxu1 %vm258_vm1, %v8796_v53 }
 0x346   : > { %v3056_v11 = vmax.f32 %v3024_v3, 0.0  ;;  %v3025_v12 = vadd.f32 %v8720_v40, %v2989_v55  ;;  %6988 = vmatprep.mubr.msk.bf16.mxu1 %vm258_vm1, %v8800_v8 }
 0x347   : > { %v3054_v31 = vmax.f32 %v3022_v9, 0.0  ;;  %v3023_v32 = vadd.f32 %v8720_v40, %v2987_v10  ;;  %v3222_v1 = vld [vmem:[#allocation3 + $0xc1] sm:$0xff] }
 0x348   : > { %3143 = vst.msk [vmem:[#allocation3 + $0xf1] sm:$0xff] %vm258_vm1, %v3056_v11  ;;  %v3057_v34 = vmax.f32 %v3025_v12, 0.0  ;;  %v3220_v22 = vld [vmem:[#allocation3 + $0xa9] sm:$0xff] }
 0x349   : > { %3141 = vst.msk [vmem:[#allocation3 + $0xd9] sm:$0xff] %vm258_vm1, %v3054_v31  ;;  %v3055_v46 = vmax.f32 %v3023_v32, 0.0  ;;  %v6964_v47 = vpop.f32.mrb[20].mxu0  ;;  %v3223_v49 = vld [vmem:[#allocation3 + $0xc9] sm:$0xff] }
 0x34a   : > { %3144 = vst.msk [vmem:[#allocation3 + $0xf9] sm:$0xff] %vm258_vm1, %v3057_v34  ;;  %v2992_v50 = vmul.f32 %v6964_v47, %v8715_v39  ;;  %v2887_v51 = vpop.f32.mrb[21].mxu0  ;;  %v3221_v24 = vld [vmem:[#allocation3 + $0xb1] sm:$0xff]  ;;  %v8820_v57 = vpack.c.bf16 %v3223_v49, %v3222_v1 }
 0x34b   : > { %3142 = vst.msk [vmem:[#allocation3 + $0xe1] sm:$0xff] %vm258_vm1, %v3055_v46  ;;  %v2990_v28 = vmul.f32 %v8715_v39, %v2887_v51  ;;  %v6965_v58 = vpop.f32.mrb[22].mxu0  ;;  %v8816_v0 = vpack.c.bf16 %v3221_v24, %v3220_v22 }
 0x34c   : > { %v3028_v14 = vadd.f32 %v8720_v40, %v2992_v50  ;;  %v2993_v16 = vmul.f32 %v6965_v58, %v8715_v39  ;;  %v2890_v60 = vpop.f32.mrb[23].mxu0 }
 0x34d   : > { %v3026_v42 = vadd.f32 %v8720_v40, %v2990_v28  ;;  %v2991_v36 = vmul.f32 %v8715_v39, %v2890_v60  ;;  %6989 = vmatmul.mubr.msk.bf16.gmra.mrb[12].mxu1 %vm258_vm1, %v8816_v0 }
 0x34e   : > { %v3060_v37 = vmax.f32 %v3028_v14, 0.0  ;;  %v3029_v38 = vadd.f32 %v8720_v40, %v2993_v16  ;;  %6992 = vmatprep.mubr.msk.bf16.mxu1 %vm258_vm1, %v8820_v57 }
 0x34f   : > { %v3058_v35 = vmax.f32 %v3026_v42, 0.0  ;;  %v3027_v41 = vadd.f32 %v8720_v40, %v2991_v36  ;;  %v3226_v56 = vld [vmem:[#allocation3 + $0xf1] sm:$0xff] }
 0x350   : > { %3147 = vst.msk [vmem:[#allocation3 + $0x121] sm:$0xff] %vm258_vm1, %v3060_v37  ;;  %v3061_v23 = vmax.f32 %v3029_v38, 0.0  ;;  %v3224_v54 = vld [vmem:[#allocation3 + $0xd9] sm:$0xff] }
 0x351   : > { %3145 = vst.msk [vmem:[#allocation3 + $0x109] sm:$0xff] %vm258_vm1, %v3058_v35  ;;  %v3059_v29 = vmax.f32 %v3027_v41, 0.0  ;;  %v6968_v44 = vpop.f32.mrb[24].mxu0  ;;  %v3227_v45 = vld [vmem:[#allocation3 + $0xf9] sm:$0xff] }
 0x352   : > { %3148 = vst.msk [vmem:[#allocation3 + $0x129] sm:$0xff] %vm258_vm1, %v3061_v23  ;;  %v2996_v59 = vmul.f32 %v6968_v44, %v8715_v39  ;;  %v2903_v62 = vpop.f32.mrb[25].mxu0  ;;  %v3225_v2 = vld [vmem:[#allocation3 + $0xe1] sm:$0xff]  ;;  %v8840_v61 = vpack.c.bf16 %v3227_v45, %v3226_v56 }
 0x353   : > { %3146 = vst.msk [vmem:[#allocation3 + $0x111] sm:$0xff] %vm258_vm1, %v3059_v29  ;;  %v2994_v48 = vmul.f32 %v8715_v39, %v2903_v62  ;;  %v6969_v15 = vpop.f32.mrb[26].mxu0  ;;  %v8836_v43 = vpack.c.bf16 %v3225_v2, %v3224_v54 }
 0x354   : > { %v3032_v63 = vadd.f32 %v8720_v40, %v2996_v59  ;;  %v2997_v3 = vmul.f32 %v6969_v15, %v8715_v39  ;;  %v2906_v55 = vpop.f32.mrb[27].mxu0  ;;  %v3158_v15 = vld [vmem:[#allocation3 + $0x8] sm:$0xff] }
 0x355   : > { %v3030_v9 = vadd.f32 %v8720_v40, %v2994_v48  ;;  %v2995_v10 = vmul.f32 %v8715_v39, %v2906_v55  ;;  %6993 = vmatmul.mubr.msk.bf16.gmra.mrb[16].mxu1 %vm258_vm1, %v8836_v43 }
 0x356   : > { %v3064_v11 = vmax.f32 %v3032_v63, 0.0  ;;  %v3033_v12 = vadd.f32 %v8720_v40, %v2997_v3  ;;  %6996 = vmatprep.mubr.msk.bf16.mxu1 %vm258_vm1, %v8840_v61 }
 0x357   : > { %v3062_v31 = vmax.f32 %v3030_v9, 0.0  ;;  %v3031_v32 = vadd.f32 %v8720_v40, %v2995_v10  ;;  %v3230_v14 = vld [vmem:[#allocation3 + $0x121] sm:$0xff]  ;;  %v3162_v10 = vld [vmem:[#allocation3 + $0x38] sm:$0xff] }
 0x358   : > { %3151 = vst.msk [vmem:[#allocation3 + $0x151] sm:$0xff] %vm258_vm1, %v3064_v11  ;;  %v3065_v34 = vmax.f32 %v3033_v12, 0.0  ;;  %v3228_v22 = vld [vmem:[#allocation3 + $0x109] sm:$0xff]  ;;  %v3160_v9 = vld [vmem:[#allocation3 + $0x20] sm:$0xff]  ;;  %v3159_v11 = vld [vmem:[#allocation3 + $0x18] sm:$0xff] }
 0x359   : > { %3149 = vst.msk [vmem:[#allocation3 + $0x139] sm:$0xff] %vm258_vm1, %v3062_v31  ;;  %v3063_v46 = vmax.f32 %v3031_v32, 0.0  ;;  %v6972_v47 = vpop.f32.mrb[28].mxu0  ;;  %v3231_v49 = vld [vmem:[#allocation3 + $0x129] sm:$0xff]  ;;  %v8887_v12 = vpack.c.bf16 %v3160_v9, %v3159_v11  ;;  %v3779_v31 = vsel %vm530_vm0, %v8758_v21, 0 }
 0x35a   : > { %3152 = vst.msk [vmem:[#allocation3 + $0x159] sm:$0xff] %vm258_vm1, %v3065_v34  ;;  %v3000_v50 = vmul.f32 %v6972_v47, %v8715_v39  ;;  %v2919_v51 = vpop.f32.mrb[29].mxu0  ;;  %v3229_v24 = vld [vmem:[#allocation3 + $0x111] sm:$0xff]  ;;  %v8860_v36 = vpack.c.bf16 %v3231_v49, %v3230_v14  ;;  %v3166_v21 = vld [vmem:[#allocation3 + $0x68] sm:$0xff] }
 0x35b   : > { %3150 = vst.msk [vmem:[#allocation3 + $0x141] sm:$0xff] %vm258_vm1, %v3063_v46  ;;  %v2998_v28 = vmul.f32 %v8715_v39, %v2919_v51  ;;  %v6973_v58 = vpop.f32.mrb[30].mxu0  ;;  %v8856_v1 = vpack.c.bf16 %v3229_v24, %v3228_v22  ;;  %v3161_v32 = vld [vmem:[#allocation3 + $0x30] sm:$0xff]  ;;  %v3163_v49 = vld [vmem:[#allocation3 + $0x48] sm:$0xff]  ;;  %v3165_v51 = vld [vmem:[#allocation3 + $0x60] sm:$0xff] }
 0x35c   : > { %v3036_v16 = vadd.f32 %v8720_v40, %v3000_v50  ;;  %v3001_v60 = vmul.f32 %v6973_v58, %v8715_v39  ;;  %v2922_v42 = vpop.f32.mrb[31].mxu0  ;;  %v8891_v34 = vpack.c.bf16 %v3162_v10, %v3161_v32  ;;  %v8896_v46 = vld [vmem:[%s9447_s2 + $0x6] sm:$0x3]  ;;  %v8906_v22 = vpack.c.bf16 %v3166_v21, %v3165_v51  ;;  %v3168_v24 = vld [vmem:[#allocation3 + $0x80] sm:$0xff]  ;;  %v3167_v58 = vld [vmem:[#allocation3 + $0x78] sm:$0xff] }
 0x35d   : > { %v3034_v37 = vadd.f32 %v8720_v40, %v2998_v28  ;;  %v2999_v38 = vmul.f32 %v8715_v39, %v2922_v42  ;;  %6997 = vmatmul.mubr.msk.bf16.gmra.mrb[20].mxu1 %vm258_vm1, %v8856_v1  ;;  %v3164_v47 = vld [vmem:[#allocation3 + $0x50] sm:$0xff]  ;;  %v3170_v28 = vld [vmem:[#allocation3 + $0x98] sm:$0xff]  ;;  %v8912_v14 = vpack.c.bf16 %v3168_v24, %v3167_v58  ;;  %v3680_v21 = vld [vmem:[#allocation3 + $0x2] sm:$0xff] }
 0x35e   : > { %v3068_v35 = vmax.f32 %v3036_v16, 0.0  ;;  %v3037_v41 = vadd.f32 %v8720_v40, %v3001_v60  ;;  %7000 = vmatprep.mubr.msk.bf16.mxu1 %vm258_vm1, %v8860_v36  ;;  %v8904_v50 = vpack.c.bf16 %v3164_v47, %v3163_v49  ;;  %v3169_v16 = vld [vmem:[#allocation3 + $0x90] sm:$0xff] }
 0x35f   : > { %v3066_v23 = vmax.f32 %v3034_v37, 0.0  ;;  %v3035_v29 = vadd.f32 %v8720_v40, %v2999_v38  ;;  %v3234_v2 = vld [vmem:[#allocation3 + $0x151] sm:$0xff]  ;;  %v3157_v40 = vld [vmem:[#allocation3] sm:$0xff]  ;;  %v8914_v60 = vpack.c.bf16 %v3170_v28, %v3169_v16  ;;  %v3174_v37 = vld [vmem:[#allocation3 + $0xc8] sm:$0xff] }
 0x360   : > { %3155 = vst.msk [vmem:[#allocation3 + $0x181] sm:$0xff] %vm258_vm1, %v3068_v35  ;;  %v3069_v44 = vmax.f32 %v3037_v41, 0.0  ;;  %v3232_v39 = vld [vmem:[#allocation3 + $0x139] sm:$0xff]  ;;  %v3189_v3 = vpack.c.bf16 %v3158_v15, %v3157_v40  ;;  %v3172_v42 = vld [vmem:[#allocation3 + $0xb0] sm:$0xff]  ;;  %v3171_v38 = vld [vmem:[#allocation3 + $0xa8] sm:$0xff] }
 0x361   : > { %3153 = vst.msk [vmem:[#allocation3 + $0x169] sm:$0xff] %vm258_vm1, %v3066_v23  ;;  %v3067_v45 = vmax.f32 %v3035_v29, 0.0  ;;  %v3235_v59 = vld [vmem:[#allocation3 + $0x159] sm:$0xff]  ;;  %v8920_v35 = vpack.c.bf16 %v3172_v42, %v3171_v38  ;;  %v3182_v40 = vld [vmem:[#allocation3 + $0x128] sm:$0xff]  ;;  %v3185_v32 = vld [vmem:[#allocation3 + $0x150] sm:$0xff] }
 0x362   : > { %3156 = vst.msk [vmem:[#allocation3 + $0x189] sm:$0xff] %vm258_vm1, %v3069_v44  ;;  %v3233_v62 = vld [vmem:[#allocation3 + $0x141] sm:$0xff]  ;;  %v8876_v48 = vpack.c.bf16 %v3235_v59, %v3234_v2  ;;  %v3178_v44 = vld [vmem:[#allocation3 + $0xf8] sm:$0xff]  ;;  %v3180_v2 = vld [vmem:[#allocation3 + $0x110] sm:$0xff] }
 0x363   : > { %3154 = vst.msk [vmem:[#allocation3 + $0x171] sm:$0xff] %vm258_vm1, %v3067_v45  ;;  %v8874_v54 = vpack.c.bf16 %v3233_v62, %v3232_v39  ;;  %v3173_v41 = vld [vmem:[#allocation3 + $0xc0] sm:$0xff]  ;;  %v3175_v45 = vld [vmem:[#allocation3 + $0xd8] sm:$0xff]  ;;  %v3177_v39 = vld [vmem:[#allocation3 + $0xf0] sm:$0xff] }
 0x364   : > { %v8922_v23 = vpack.c.bf16 %v3174_v37, %v3173_v41  ;;  %v3176_v29 = vld [vmem:[#allocation3 + $0xe0] sm:$0xff]  ;;  %v8930_v62 = vpack.c.bf16 %v3178_v44, %v3177_v39  ;;  %v3179_v15 = vld [vmem:[#allocation3 + $0x108] sm:$0xff]  ;;  %v3186_v10 = vld [vmem:[#allocation3 + $0x158] sm:$0xff] }
 0x365   : > { %7001 = vmatmul.mubr.msk.bf16.gmra.mrb[24].mxu1 %vm258_vm1, %v8874_v54  ;;  %v8928_v59 = vpack.c.bf16 %v3176_v29, %v3175_v45  ;;  %v3184_v9 = vld [vmem:[#allocation3 + $0x140] sm:$0xff]  ;;  %v3183_v11 = vld [vmem:[#allocation3 + $0x138] sm:$0xff]  ;;  %v8946_v47 = vpack.c.bf16 %v3186_v10, %v3185_v32  ;;  %v3681_v49 = vld [vmem:[#allocation3 + $0xa] sm:$0xff]  ;;  %v4073_v29 = vsel %vm530_vm0, %v8896_v46, 0 }
 0x366   : > { %7004 = vmatprep.mubr.msk.bf16.mxu1 %vm258_vm1, %v8876_v48  ;;  %v3712_v28 = vpack.c.bf16 %v3681_v49, %v3680_v21  ;;  %v3682_v16 = vld [vmem:[#allocation3 + $0x1a] sm:$0xff]  ;;  %v3683_v42 = vld [vmem:[#allocation3 + $0x22] sm:$0xff]  ;;  %v3684_v37 = vld [vmem:[#allocation3 + $0x32] sm:$0xff] }
 0x367   : > { %v3685_v38 = vld [vmem:[#allocation3 + $0x3a] sm:$0xff]  ;;  %v8957_v41 = vpack.c.bf16 %v3683_v42, %v3682_v16  ;;  %v6192_v45 = vld [vmem:[%s9447_s2 + $0x8] sm:$0x3]  ;;  %v3686_v39 = vld [vmem:[#allocation3 + $0x4a] sm:$0xff] }
 0x368   : > { %v3236_v56 = vld [vmem:[#allocation3 + $0x169] sm:$0xff]  ;;  %v8961_v44 = vpack.c.bf16 %v3685_v38, %v3684_v37  ;;  %v3693_v32 = vld [vmem:[#allocation3 + $0x9a] sm:$0xff] }
 0x369   : > { %v3187_v24 = vld [vmem:[#allocation3 + $0x168] sm:$0xff]  ;;  %v3698_v38 = vld [vmem:[#allocation3 + $0xda] sm:$0xff] }
 0x36a   : > { %v3237_v63 = vld [vmem:[#allocation3 + $0x171] sm:$0xff]  ;;  %v3691_v10 = vld [vmem:[#allocation3 + $0x82] sm:$0xff] }
 0x36b   : > { %v8882_v55 = vpack.c.bf16 %v3237_v63, %v3236_v56  ;;  %v8936_v56 = vpack.c.bf16 %v3180_v2, %v3179_v15  ;;  %v3181_v63 = vld [vmem:[#allocation3 + $0x120] sm:$0xff]  ;;  %v3188_v51 = vld [vmem:[#allocation3 + $0x170] sm:$0xff] }
 0x36c   : > { %v8952_v58 = vpack.c.bf16 %v3188_v51, %v3187_v24  ;;  %v3687_v2 = vld [vmem:[#allocation3 + $0x52] sm:$0xff]  ;;  %v3689_v15 = vld [vmem:[#allocation3 + $0x6a] sm:$0xff] }
 0x36d   : > { %7005 = vmatmul.mubr.msk.bf16.gmra.mrb[28].mxu1 %vm258_vm1, %v8882_v55  ;;  %v3694_v51 = vld [vmem:[#allocation3 + $0xaa] sm:$0xff]  ;;  %v3695_v24 = vld [vmem:[#allocation3 + $0xb2] sm:$0xff] }
 0x36e   : > { %7010 = vmatprep.mubr.msk.bf16.mxu1 %vm258_vm1, %v3189_v3  ;;  %v8938_v3 = vpack.c.bf16 %v3182_v40, %v3181_v63  ;;  %v3688_v40 = vld [vmem:[#allocation3 + $0x62] sm:$0xff]  ;;  %v3697_v16 = vld [vmem:[#allocation3 + $0xca] sm:$0xff]  ;;  %v8987_v42 = vpack.c.bf16 %v3695_v24, %v3694_v51 }
 0x36f   : > { %v8973_v63 = vpack.c.bf16 %v3689_v15, %v3688_v40 }
 0x375   : > { %7011 = vmatmul.mubr.msk.bf16.vlgmr.msra.gmra.mrb[0].mxu1 %vm258_vm1, %v8887_v12 }
 0x376   : > { %7043 = vmatpush3.bf16.msra.mxu1 %v3779_v31  ;;  %7014 = vmatprep.mubr.msk.bf16.mxu1 %vm258_vm1, %v8891_v34  ;;  %v8944_v31 = vpack.c.bf16 %v3184_v9, %v3183_v11  ;;  %v3690_v9 = vld [vmem:[#allocation3 + $0x7a] sm:$0xff]  ;;  %v3692_v11 = vld [vmem:[#allocation3 + $0x92] sm:$0xff] }
 0x377   : > { %7804 = vmatprep.subr.msk.bf16.mxu1 %vm530_vm0, %v8896_v46  ;;  %v8971_v46 = vpack.c.bf16 %v3687_v2, %v3686_v39  ;;  %v8979_v21 = vpack.c.bf16 %v3691_v10, %v3690_v9  ;;  %v8981_v49 = vpack.c.bf16 %v3693_v32, %v3692_v11  ;;  %v3700_v39 = vld [vmem:[#allocation3 + $0xf2] sm:$0xff]  ;;  %v3701_v2 = vld [vmem:[#allocation3 + $0xfa] sm:$0xff]  ;;  %v3702_v9 = vld [vmem:[#allocation3 + $0x10a] sm:$0xff] }
 0x378   : > { %v8997_v15 = vpack.c.bf16 %v3701_v2, %v3700_v39  ;;  %v3703_v10 = vld [vmem:[#allocation3 + $0x112] sm:$0xff]  ;;  %v3704_v11 = vld [vmem:[#allocation3 + $0x122] sm:$0xff]  ;;  %v3705_v32 = vld [vmem:[#allocation3 + $0x12a] sm:$0xff] }
 0x379   : > { %v9003_v51 = vpack.c.bf16 %v3703_v10, %v3702_v9  ;;  %v9005_v24 = vpack.c.bf16 %v3705_v32, %v3704_v11  ;;  %v3710_v9 = vld [vmem:[#allocation3 + $0x16a] sm:$0xff]  ;;  %v3711_v10 = vld [vmem:[#allocation3 + $0x172] sm:$0xff]  ;;  %v4367_v32 = vsel %vm530_vm0, %v6192_v45, 0 }
 0x37a   : > { %v9019_v11 = vpack.c.bf16 %v3711_v10, %v3710_v9 }
 0x37d   : > { %7015 = vmatmul.mubr.msk.bf16.gmra.mrb[4].mxu1 %vm258_vm1, %v8904_v50 }
 0x37e   : > { %7018 = vmatprep.mubr.msk.bf16.mxu1 %vm258_vm1, %v8906_v22 }
 0x385   : > { %7019 = vmatmul.mubr.msk.bf16.gmra.mrb[8].mxu1 %vm258_vm1, %v8912_v14 }
 0x386   : > { %7022 = vmatprep.mubr.msk.bf16.mxu1 %vm258_vm1, %v8914_v60 }
 0x38d   : > { %7023 = vmatmul.mubr.msk.bf16.gmra.mrb[12].mxu1 %vm258_vm1, %v8920_v35 }
 0x38e   : > { %7026 = vmatprep.mubr.msk.bf16.mxu1 %vm258_vm1, %v8922_v23 }
 0x395   : > { %7027 = vmatmul.mubr.msk.bf16.gmra.mrb[16].mxu1 %vm258_vm1, %v8928_v59 }
 0x396   : > { %7030 = vmatprep.mubr.msk.bf16.mxu1 %vm258_vm1, %v8930_v62 }
 0x39d   : > { %7031 = vmatmul.mubr.msk.bf16.gmra.mrb[20].mxu1 %vm258_vm1, %v8936_v56 }
 0x39e   : > { %7034 = vmatprep.mubr.msk.bf16.mxu1 %vm258_vm1, %v8938_v3 }
 0x3a5   : > { %7035 = vmatmul.mubr.msk.bf16.gmra.mrb[24].mxu1 %vm258_vm1, %v8944_v31 }
 0x3a6   : > { %7038 = vmatprep.mubr.msk.bf16.mxu1 %vm258_vm1, %v8946_v47 }
 0x3ad   : > { %7039 = vmatmul.mubr.msk.bf16.gmra.mrb[28].mxu1 %vm258_vm1, %v8952_v58 }
 0x3ae   : > { %7044 = vmatprep.mubr.msk.bf16.mxu1 %vm258_vm1, %v3712_v28  ;;  %v3696_v28 = vld [vmem:[#allocation3 + $0xc2] sm:$0xff] }
 0x3af   : > { %v8989_v37 = vpack.c.bf16 %v3697_v16, %v3696_v28  ;;  %v3706_v28 = vld [vmem:[#allocation3 + $0x13a] sm:$0xff]  ;;  %v3707_v16 = vld [vmem:[#allocation3 + $0x142] sm:$0xff] }
 0x3b0   : > { %v9011_v39 = vpack.c.bf16 %v3707_v16, %v3706_v28  ;;  %v6209_v28 = vld [vmem:[%s9447_s2 + $0xa] sm:$0x3] }
 0x3b5   : > { %7045 = vmatmul.mubr.msk.bf16.vlgmr.msra.gmra.mrb[0].mxu1 %vm258_vm1, %v8957_v41 }
 0x3b6   : > { %7077 = vmatpush3.bf16.msra.mxu1 %v4073_v29  ;;  %7048 = vmatprep.mubr.msk.bf16.mxu1 %vm258_vm1, %v8961_v44  ;;  %v3699_v29 = vld [vmem:[#allocation3 + $0xe2] sm:$0xff] }
 0x3b7   : > { %7805 = vmatprep.subr.msk.bf16.mxu1 %vm530_vm0, %v6192_v45  ;;  %v8995_v40 = vpack.c.bf16 %v3699_v29, %v3698_v38  ;;  %v3708_v38 = vld [vmem:[#allocation3 + $0x152] sm:$0xff]  ;;  %v3709_v29 = vld [vmem:[#allocation3 + $0x15a] sm:$0xff] }
 0x3b8   : > { %v9013_v2 = vpack.c.bf16 %v3709_v29, %v3708_v38  ;;  %v4004_v45 = vld [vmem:[#allocation3 + $0x180] sm:$0xff]  ;;  %v4661_v38 = vsel %vm530_vm0, %v6209_v28, 0  ;;  %v6226_v29 = vld [vmem:[%s9447_s2 + $0xc] sm:$0x3] }
 0x3bd   : > { %7049 = vmatmul.mubr.msk.bf16.gmra.mrb[4].mxu1 %vm258_vm1, %v8971_v46 }
 0x3be   : > { %7052 = vmatprep.mubr.msk.bf16.mxu1 %vm258_vm1, %v8973_v63 }
 0x3c5   : > { %7053 = vmatmul.mubr.msk.bf16.gmra.mrb[8].mxu1 %vm258_vm1, %v8979_v21 }
 0x3c6   : > { %7056 = vmatprep.mubr.msk.bf16.mxu1 %vm258_vm1, %v8981_v49 }
 0x3cd   : > { %7057 = vmatmul.mubr.msk.bf16.gmra.mrb[12].mxu1 %vm258_vm1, %v8987_v42 }
 0x3ce   : > { %7060 = vmatprep.mubr.msk.bf16.mxu1 %vm258_vm1, %v8989_v37 }
 0x3d5   : > { %7061 = vmatmul.mubr.msk.bf16.gmra.mrb[16].mxu1 %vm258_vm1, %v8995_v40 }
 0x3d6   : > { %7064 = vmatprep.mubr.msk.bf16.mxu1 %vm258_vm1, %v8997_v15 }
 0x3dd   : > { %7065 = vmatmul.mubr.msk.bf16.gmra.mrb[20].mxu1 %vm258_vm1, %v9003_v51 }
 0x3de   : > { %7068 = vmatprep.mubr.msk.bf16.mxu1 %vm258_vm1, %v9005_v24 }
 0x3e5   : > { %7069 = vmatmul.mubr.msk.bf16.gmra.mrb[24].mxu1 %vm258_vm1, %v9011_v39 }
 0x3e6   : > { %7072 = vmatprep.mubr.msk.bf16.mxu1 %vm258_vm1, %v9013_v2 }
 0x3ed   : > { %7073 = vmatmul.mubr.msk.bf16.gmra.mrb[28].mxu1 %vm258_vm1, %v9019_v11 }
 0x3ee   : > { %7078 = vmatprep.mubr.msk.bf16.mxu1 %vm258_vm1, %v8887_v12  ;;  %v4005_v12 = vld [vmem:[#allocation3 + $0x188] sm:$0xff] }
 0x3ef   : > { %v9058_v16 = vpack.c.bf16 %v4005_v12, %v4004_v45  ;;  %v5157_v12 = vld [vmem:[#allocation3 + $0x79] sm:$0xff] }
 0x3f5   : > { %7079 = vmatmul.mubr.msk.bf16.vlgmr.msra.gmra.mrb[0].mxu1 %vm258_vm1, %v8891_v34 }
 0x3f6   : > { %7111 = vmatpush3.bf16.msra.mxu1 %v4367_v32  ;;  %7082 = vmatprep.mubr.msk.bf16.mxu1 %vm258_vm1, %v8904_v50  ;;  %v6260_v32 = vld [vmem:[%s9447_s2 + $0x10] sm:$0x3] }
 0x3f7   : > { %7806 = vmatprep.subr.msk.bf16.mxu1 %vm530_vm0, %v6209_v28  ;;  %v5160_v28 = vld [vmem:[#allocation3 + $0x99] sm:$0xff] }
 0x3fd   : > { %7083 = vmatmul.mubr.msk.bf16.gmra.mrb[4].mxu1 %vm258_vm1, %v8906_v22 }
 0x3fe   : > { %7086 = vmatprep.mubr.msk.bf16.mxu1 %vm258_vm1, %v8912_v14 }
 0x405   : > { %7087 = vmatmul.mubr.msk.bf16.gmra.mrb[8].mxu1 %vm258_vm1, %v8914_v60 }
 0x406   : > { %7090 = vmatprep.mubr.msk.bf16.mxu1 %vm258_vm1, %v8920_v35 }
 0x40d   : > { %7091 = vmatmul.mubr.msk.bf16.gmra.mrb[12].mxu1 %vm258_vm1, %v8922_v23 }
 0x40e   : > { %7094 = vmatprep.mubr.msk.bf16.mxu1 %vm258_vm1, %v8928_v59 }
 0x415   : > { %7095 = vmatmul.mubr.msk.bf16.gmra.mrb[16].mxu1 %vm258_vm1, %v8930_v62 }
 0x416   : > { %7098 = vmatprep.mubr.msk.bf16.mxu1 %vm258_vm1, %v8936_v56 }
 0x41d   : > { %7099 = vmatmul.mubr.msk.bf16.gmra.mrb[20].mxu1 %vm258_vm1, %v8938_v3 }
 0x41e   : > { %7102 = vmatprep.mubr.msk.bf16.mxu1 %vm258_vm1, %v8944_v31 }
 0x425   : > { %7103 = vmatmul.mubr.msk.bf16.gmra.mrb[24].mxu1 %vm258_vm1, %v8946_v47 }
 0x426   : > { %7106 = vmatprep.mubr.msk.bf16.mxu1 %vm258_vm1, %v8952_v58 }
 0x42d   : > { %7107 = vmatmul.mubr.msk.bf16.gmra.mrb[28].mxu1 %vm258_vm1, %v9058_v16 }
 0x42e   : > { %7112 = vmatprep.mubr.msk.bf16.mxu1 %vm258_vm1, %v8748_v7  ;;  %v4299_v7 = vld [vmem:[#allocation3 + $0x189] sm:$0xff] }
 0x435   : > { %7113 = vmatmul.mubr.msk.bf16.vlgmr.msra.gmra.mrb[0].mxu1 %vm258_vm1, %v8753_v17  ;;  %v4298_v17 = vld [vmem:[#allocation3 + $0x181] sm:$0xff] }
 0x436   : > { %7145 = vmatpush3.bf16.msra.mxu1 %v4661_v38  ;;  %7116 = vmatprep.mubr.msk.bf16.mxu1 %vm258_vm1, %v8776_v52  ;;  %v9097_v52 = vpack.c.bf16 %v4299_v7, %v4298_v17  ;;  %v9500_v17 = vunpack.c.h.bf16 %v8113_v5 }
 0x437   : > { %7807 = vmatprep.subr.msk.bf16.mxu1 %vm530_vm0, %v6226_v29 }
 0x43d   : > { %7117 = vmatmul.mubr.msk.bf16.gmra.mrb[4].mxu1 %vm258_vm1, %v8780_v30  ;;  %v4956_v30 = vsel %vm530_vm0, %v6226_v29, 0 }
 0x43e   : > { %7120 = vmatprep.mubr.msk.bf16.mxu1 %vm258_vm1, %v8796_v53  ;;  %v6243_v53 = vld [vmem:[%s9447_s2 + $0xe] sm:$0x3] }
 0x43f   : > { %v5250_v10 = vsel %vm530_vm0, %v6243_v53, 0 }
 0x445   : > { %7121 = vmatmul.mubr.msk.bf16.gmra.mrb[8].mxu1 %vm258_vm1, %v8800_v8  ;;  %v4592_v8 = vld [vmem:[#allocation3 + $0x182] sm:$0xff] }
 0x446   : > { %7124 = vmatprep.mubr.msk.bf16.mxu1 %vm258_vm1, %v8816_v0 }
 0x44d   : > { %7125 = vmatmul.mubr.msk.bf16.gmra.mrb[12].mxu1 %vm258_vm1, %v8820_v57 }
 0x44e   : > { %7128 = vmatprep.mubr.msk.bf16.mxu1 %vm258_vm1, %v8836_v43 }
 0x455   : > { %7129 = vmatmul.mubr.msk.bf16.gmra.mrb[16].mxu1 %vm258_vm1, %v8840_v61 }
 0x456   : > { %7132 = vmatprep.mubr.msk.bf16.mxu1 %vm258_vm1, %v8856_v1 }
 0x45d   : > { %7133 = vmatmul.mubr.msk.bf16.gmra.mrb[20].mxu1 %vm258_vm1, %v8860_v36 }
 0x45e   : > { %7136 = vmatprep.mubr.msk.bf16.mxu1 %vm258_vm1, %v8874_v54 }
 0x465   : > { %7137 = vmatmul.mubr.msk.bf16.gmra.mrb[24].mxu1 %vm258_vm1, %v8876_v48 }
 0x466   : > { %7140 = vmatprep.mubr.msk.bf16.mxu1 %vm258_vm1, %v8882_v55 }
 0x46d   : > { %7141 = vmatmul.mubr.msk.bf16.gmra.mrb[28].mxu1 %vm258_vm1, %v9097_v52 }
 0x46e   : > { %7146 = vmatprep.mubr.msk.bf16.mxu1 %vm258_vm1, %v8957_v41  ;;  %v4593_v41 = vld [vmem:[#allocation3 + $0x18a] sm:$0xff] }
 0x46f   : > { %v9136_v9 = vpack.c.bf16 %v4593_v41, %v4592_v8 }
 0x475   : > { %7147 = vmatmul.mubr.msk.bf16.vlgmr.msra.gmra.mrb[0].mxu1 %vm258_vm1, %v8961_v44 }
 0x476   : > { %7179 = vmatpush3.bf16.msra.mxu1 %v4956_v30  ;;  %7150 = vmatprep.mubr.msk.bf16.mxu1 %vm258_vm1, %v8971_v46 }
 0x477   : > { %7808 = vmatprep.subr.msk.bf16.mxu1 %vm530_vm0, %v6243_v53  ;;  %v9501_v53 = vunpack.c.h.bf16 %v8110_v4 }
 0x47d   : > { %7151 = vmatmul.mubr.msk.bf16.gmra.mrb[4].mxu1 %vm258_vm1, %v8973_v63 }
 0x47e   : > { %7154 = vmatprep.mubr.msk.bf16.mxu1 %vm258_vm1, %v8979_v21 }
 0x485   : > { %7155 = vmatmul.mubr.msk.bf16.gmra.mrb[8].mxu1 %vm258_vm1, %v8981_v49 }
 0x486   : > { %7158 = vmatprep.mubr.msk.bf16.mxu1 %vm258_vm1, %v8987_v42 }
 0x48d   : > { %7159 = vmatmul.mubr.msk.bf16.gmra.mrb[12].mxu1 %vm258_vm1, %v8989_v37 }
 0x48e   : > { %7162 = vmatprep.mubr.msk.bf16.mxu1 %vm258_vm1, %v8995_v40 }
 0x495   : > { %7163 = vmatmul.mubr.msk.bf16.gmra.mrb[16].mxu1 %vm258_vm1, %v8997_v15 }
 0x496   : > { %7166 = vmatprep.mubr.msk.bf16.mxu1 %vm258_vm1, %v9003_v51 }
 0x49d   : > { %7167 = vmatmul.mubr.msk.bf16.gmra.mrb[20].mxu1 %vm258_vm1, %v9005_v24 }
 0x49e   : > { %7170 = vmatprep.mubr.msk.bf16.mxu1 %vm258_vm1, %v9011_v39 }
 0x4a5   : > { %7171 = vmatmul.mubr.msk.bf16.gmra.mrb[24].mxu1 %vm258_vm1, %v9013_v2 }
 0x4a6   : > { %7174 = vmatprep.mubr.msk.bf16.mxu1 %vm258_vm1, %v9019_v11 }
 0x4ad   : > { %7175 = vmatmul.mubr.msk.bf16.gmra.mrb[28].mxu1 %vm258_vm1, %v9136_v9 }
 0x4ae   : > { %7180 = vmatprep.mubr.msk.bf16.mxu1 %vm258_vm1, %v8891_v34  ;;  %v4887_v34 = vld [vmem:[#allocation3 + $0x198] sm:$0xff] }
 0x4b5   : > { %7181 = vmatmul.mubr.msk.bf16.vlgmr.msra.gmra.mrb[0].mxu1 %vm258_vm1, %v8904_v50  ;;  %v4888_v50 = vld [vmem:[#allocation3 + $0x1a0] sm:$0xff] }
 0x4b6   : > { %7213 = vmatpush3.bf16.msra.mxu1 %v5250_v10  ;;  %7184 = vmatprep.mubr.msk.bf16.mxu1 %vm258_vm1, %v8906_v22  ;;  %v4904_v22 = vpack.c.bf16 %v4888_v50, %v4887_v34 }
 0x4b7   : > { %7809 = vmatprep.subr.msk.bf16.mxu1 %vm530_vm0, %v6260_v32 }
 0x4bd   : > { %7185 = vmatmul.mubr.msk.bf16.gmra.mrb[4].mxu1 %vm258_vm1, %v8912_v14  ;;  %v5152_v14 = vld [vmem:[#allocation3 + $0x39] sm:$0xff] }
 0x4be   : > { %7188 = vmatprep.mubr.msk.bf16.mxu1 %vm258_vm1, %v8914_v60  ;;  %v5151_v60 = vld [vmem:[#allocation3 + $0x31] sm:$0xff] }
 0x4c5   : > { %7189 = vmatmul.mubr.msk.bf16.gmra.mrb[8].mxu1 %vm258_vm1, %v8920_v35  ;;  %v5183_v35 = vpack.c.bf16 %v5152_v14, %v5151_v60 }
 0x4c6   : > { %7192 = vmatprep.mubr.msk.bf16.mxu1 %vm258_vm1, %v8922_v23  ;;  %v5154_v23 = vld [vmem:[#allocation3 + $0x51] sm:$0xff] }
 0x4cd   : > { %7193 = vmatmul.mubr.msk.bf16.gmra.mrb[12].mxu1 %vm258_vm1, %v8928_v59  ;;  %v5156_v59 = vld [vmem:[#allocation3 + $0x69] sm:$0xff] }
 0x4ce   : > { %7196 = vmatprep.mubr.msk.bf16.mxu1 %vm258_vm1, %v8930_v62  ;;  %v5153_v62 = vld [vmem:[#allocation3 + $0x49] sm:$0xff] }
 0x4d5   : > { %7197 = vmatmul.mubr.msk.bf16.gmra.mrb[16].mxu1 %vm258_vm1, %v8936_v56  ;;  %v5184_v56 = vpack.c.bf16 %v5154_v23, %v5153_v62  ;;  %v9502_v23 = vunpack.c.l.bf16 %v8123_v13 }
 0x4d6   : > { %7200 = vmatprep.mubr.msk.bf16.mxu1 %vm258_vm1, %v8938_v3  ;;  %v5544_v3 = vsel %vm530_vm0, %v6260_v32, 0 }
 0x4dd   : > { %7201 = vmatmul.mubr.msk.bf16.gmra.mrb[20].mxu1 %vm258_vm1, %v8944_v31  ;;  %v5155_v31 = vld [vmem:[#allocation3 + $0x61] sm:$0xff] }
 0x4de   : > { %7204 = vmatprep.mubr.msk.bf16.mxu1 %vm258_vm1, %v8946_v47  ;;  %v5185_v47 = vpack.c.bf16 %v5156_v59, %v5155_v31 }
 0x4e5   : > { %7205 = vmatmul.mubr.msk.bf16.gmra.mrb[24].mxu1 %vm258_vm1, %v8952_v58  ;;  %v5158_v58 = vld [vmem:[#allocation3 + $0x81] sm:$0xff] }
 0x4e6   : > { %7208 = vmatprep.mubr.msk.bf16.mxu1 %vm258_vm1, %v9058_v16  ;;  %v5186_v45 = vpack.c.bf16 %v5158_v58, %v5157_v12  ;;  %v5159_v16 = vld [vmem:[#allocation3 + $0x91] sm:$0xff]  ;;  %v9504_v58 = vunpack.c.h.bf16 %v8123_v13 }
 0x4e7   : > { %v5187_v38 = vpack.c.bf16 %v5160_v28, %v5159_v16 }
 0x4ed   : > { %7209 = vmatmul.mubr.msk.bf16.gmra.mrb[28].mxu1 %vm258_vm1, %v4904_v22 }
 0x4ee   : > { %7214 = vmatprep.mubr.msk.bf16.mxu1 %vm258_vm1, %v5183_v35 }
 0x4f5   : > { %7215 = vmatmul.mubr.msk.bf16.vlgmr.msra.gmra.mrb[0].mxu1 %vm258_vm1, %v5184_v56  ;;  %v9503_v56 = vunpack.c.l.bf16 %v8116_v6 }
 0x4f6   : > { %7247 = vmatpush3.bf16.msra.mxu1 %v5544_v3  ;;  %7218 = vmatprep.mubr.msk.bf16.mxu1 %vm258_vm1, %v5185_v47 }
 0x4fd   : > { %7219 = vmatmul.mubr.msk.bf16.gmra.mrb[4].mxu1 %vm258_vm1, %v5186_v45  ;;  %v9505_v45 = vunpack.c.h.bf16 %v8116_v6 }
 0x4fe   : > { %7222 = vmatprep.mubr.msk.bf16.mxu1 %vm258_vm1, %v5187_v38 }
 0x505   : > { %7223 = vmatmul.mubr.msk.bf16.gmra.mrb[8].mxu1 %vm258_vm1, %v8816_v0  ;;  %v5181_v0 = vld [vmem:[#allocation3 + $0x199] sm:$0xff] }
 0x506   : > { %7226 = vmatprep.mubr.msk.bf16.mxu1 %vm258_vm1, %v8820_v57  ;;  %v5182_v57 = vld [vmem:[#allocation3 + $0x1a1] sm:$0xff] }
 0x50d   : > { %7227 = vmatmul.mubr.msk.bf16.gmra.mrb[12].mxu1 %vm258_vm1, %v8836_v43  ;;  %v5198_v43 = vpack.c.bf16 %v5182_v57, %v5181_v0 }
 0x50e   : > { %7230 = vmatprep.mubr.msk.bf16.mxu1 %vm258_vm1, %v8840_v61  ;;  %v5475_v61 = vld [vmem:[#allocation3 + $0x19a] sm:$0xff] }
 0x515   : > { %7231 = vmatmul.mubr.msk.bf16.gmra.mrb[16].mxu1 %vm258_vm1, %v8856_v1  ;;  %v5476_v1 = vld [vmem:[#allocation3 + $0x1a2] sm:$0xff] }
 0x516   : > { %7234 = vmatprep.mubr.msk.bf16.mxu1 %vm258_vm1, %v8860_v36  ;;  %v5492_v36 = vpack.c.bf16 %v5476_v1, %v5475_v61 }
 0x51d   : > { %7235 = vmatmul.mubr.msk.bf16.gmra.mrb[20].mxu1 %vm258_vm1, %v8874_v54  ;;  %v9237_v54 = vld [vmem:[%s9449_s4] ss:$0 sm:$0xff] }
 0x51e   : > { %7238 = vmatprep.mubr.msk.bf16.mxu1 %vm258_vm1, %v8876_v48  ;;  %v9242_v48 = vld [vmem:[%s9449_s4 + $0x1] ss:$0 sm:$0xff] }
 0x525   : > { %7239 = vmatmul.mubr.msk.bf16.gmra.mrb[24].mxu1 %vm258_vm1, %v8882_v55 }
 0x526   : > { %7242 = vmatprep.mubr.msk.bf16.mxu1 %vm258_vm1, %v9097_v52 }
 0x52d   : > { %7243 = vmatmul.mubr.msk.bf16.gmra.mrb[28].mxu1 %vm258_vm1, %v5198_v43 }
 0x52e   : > { %7248 = vmatprep.mubr.msk.bf16.mxu1 %vm258_vm1, %v8961_v44 }
 0x535   : > { %7249 = vmatmul.mubr.msk.bf16.vlgmr.msra.gmra.mrb[0].mxu1 %vm258_vm1, %v8971_v46 }
 0x536   : > { %7252 = vmatprep.mubr.msk.bf16.mxu1 %vm258_vm1, %v8973_v63 }
 0x53d   : > { %7253 = vmatmul.mubr.msk.bf16.gmra.mrb[4].mxu1 %vm258_vm1, %v8979_v21 }
 0x53e   : > { %7256 = vmatprep.mubr.msk.bf16.mxu1 %vm258_vm1, %v8981_v49 }
 0x545   : > { %7257 = vmatmul.mubr.msk.bf16.gmra.mrb[8].mxu1 %vm258_vm1, %v8987_v42 }
 0x546   : > { %7260 = vmatprep.mubr.msk.bf16.mxu1 %vm258_vm1, %v8989_v37 }
 0x54d   : > { %7261 = vmatmul.mubr.msk.bf16.gmra.mrb[12].mxu1 %vm258_vm1, %v8995_v40 }
 0x54e   : > { %7264 = vmatprep.mubr.msk.bf16.mxu1 %vm258_vm1, %v8997_v15 }
 0x555   : > { %7265 = vmatmul.mubr.msk.bf16.gmra.mrb[16].mxu1 %vm258_vm1, %v9003_v51  ;;  %v9498_v51 = vunpack.c.l.bf16 %v8113_v5 }
 0x556   : > { %7268 = vmatprep.mubr.msk.bf16.mxu1 %vm258_vm1, %v9005_v24 }
 0x55d   : > { %7269 = vmatmul.mubr.msk.bf16.gmra.mrb[20].mxu1 %vm258_vm1, %v9011_v39 }
 0x55e   : > { %7272 = vmatprep.mubr.msk.bf16.mxu1 %vm258_vm1, %v9013_v2  ;;  %v9499_v2 = vunpack.c.l.bf16 %v8110_v4 }
 0x565   : > { %7273 = vmatmul.mubr.msk.bf16.gmra.mrb[24].mxu1 %vm258_vm1, %v9019_v11 }
 0x566   : > { %7276 = vmatprep.mubr.msk.bf16.mxu1 %vm258_vm1, %v9136_v9 }
 0x56d   : > { %7277 = vmatmul.mubr.msk.bf16.gmra.mrb[28].mxu1 %vm258_vm1, %v5492_v36 }
 0x608   : > { %v7250_v55 = vpop.f32.mrb[0].mxu1 }
 0x609   : > { %v5745_v44 = vmul.f32 %v7250_v55, %v9237_v54  ;;  %v5580_v46 = vpop.f32.mrb[1].mxu1 }
 0x60a   : > { %v5743_v63 = vmul.f32 %v9237_v54, %v5580_v46  ;;  %v7251_v21 = vpop.f32.mrb[2].mxu1 }
 0x60b   : > { %v5781_v49 = vadd.f32 %v9242_v48, %v5745_v44  ;;  %v5746_v42 = vmul.f32 %v7251_v21, %v9237_v54  ;;  %v5583_v37 = vpop.f32.mrb[3].mxu1 }
 0x60c   : > { %v5779_v40 = vadd.f32 %v9242_v48, %v5743_v63  ;;  %v5744_v15 = vmul.f32 %v9237_v54, %v5583_v37  ;;  %v9506_v63 = vunpack.c.l.bf16 %v8132_v19 }
 0x60d   : > { %v5813_v24 = vadd.f32 %v9498_v51, %v5781_v49  ;;  %v5782_v39 = vadd.f32 %v9242_v48, %v5746_v42  ;;  %v9507_v42 = vunpack.c.l.bf16 %v8129_v18  ;;  %v9508_v51 = vunpack.c.h.bf16 %v8132_v19 }
 0x60e   : > { %v5811_v11 = vadd.f32 %v9499_v2, %v5779_v40  ;;  %v5780_v29 = vadd.f32 %v9242_v48, %v5744_v15  ;;  %v9509_v2 = vunpack.c.h.bf16 %v8129_v18 }
 0x60f   : > { %v5845_v7 = vmax.f32 %v5813_v24, 0.0  ;;  %v5814_v52 = vadd.f32 %v9500_v17, %v5782_v39 }
 0x610   : > { %v5843_v30 = vmax.f32 %v5811_v11, 0.0  ;;  %v5812_v8 = vadd.f32 %v9501_v53, %v5780_v29  ;;  %v7254_v41 = vpop.f32.mrb[4].mxu1 }
 0x611   : > { %5877 = vst.msk [vmem:[%s9257_s25 + $0x10] sm:$0xff] %vm258_vm1, %v5845_v7  ;;  %v5846_v9 = vmax.f32 %v5814_v52, 0.0  ;;  %v5749_v10 = vmul.f32 %v7254_v41, %v9237_v54  ;;  %v5596_v32 = vpop.f32.mrb[5].mxu1 }
 0x612   : > { %5875 = vst.msk [vmem:[%s9257_s25] sm:$0xff] %vm258_vm1, %v5843_v30  ;;  %v5844_v34 = vmax.f32 %v5812_v8, 0.0  ;;  %v5747_v50 = vmul.f32 %v9237_v54, %v5596_v32  ;;  %v7255_v22 = vpop.f32.mrb[6].mxu1  ;;  %v9510_v32 = vunpack.c.l.bf16 %v8154_v25 }
 0x613   : > { %5878 = vst.msk [vmem:[%s9257_s25 + $0x18] sm:$0xff] %vm258_vm1, %v5846_v9  ;;  %v5785_v5 = vadd.f32 %v9242_v48, %v5749_v10  ;;  %v5750_v4 = vmul.f32 %v7255_v22, %v9237_v54  ;;  %v5599_v14 = vpop.f32.mrb[7].mxu1  ;;  %v9511_v22 = vunpack.c.l.bf16 %v8135_v20 }
 0x614   : > { %5876 = vst.msk [vmem:[%s9257_s25 + $0x8] sm:$0xff] %vm258_vm1, %v5844_v34  ;;  %v5783_v60 = vadd.f32 %v9242_v48, %v5747_v50  ;;  %v5748_v35 = vmul.f32 %v9237_v54, %v5599_v14 }
 0x615   : > { %v5817_v59 = vadd.f32 %v9502_v23, %v5785_v5  ;;  %v5786_v62 = vadd.f32 %v9242_v48, %v5750_v4 }
 0x616   : > { %v5815_v3 = vadd.f32 %v9503_v56, %v5783_v60  ;;  %v5784_v31 = vadd.f32 %v9242_v48, %v5748_v35  ;;  %v9512_v60 = vunpack.c.h.bf16 %v8154_v25 }
 0x617   : > { %v5849_v47 = vmax.f32 %v5817_v59, 0.0  ;;  %v5818_v28 = vadd.f32 %v9504_v58, %v5786_v62  ;;  %v9513_v59 = vunpack.c.h.bf16 %v8135_v20 }
 0x618   : > { %v5847_v12 = vmax.f32 %v5815_v3, 0.0  ;;  %v5816_v16 = vadd.f32 %v9505_v45, %v5784_v31  ;;  %v7258_v38 = vpop.f32.mrb[8].mxu1 }
 0x619   : > { %5881 = vst.msk [vmem:[%s9257_s25 + $0x30] sm:$0xff] %vm258_vm1, %v5849_v47  ;;  %v5850_v0 = vmax.f32 %v5818_v28, 0.0  ;;  %v5753_v57 = vmul.f32 %v7258_v38, %v9237_v54  ;;  %v5612_v43 = vpop.f32.mrb[9].mxu1 }
 0x61a   : > { %5879 = vst.msk [vmem:[%s9257_s25 + $0x20] sm:$0xff] %vm258_vm1, %v5847_v12  ;;  %v5848_v61 = vmax.f32 %v5816_v16, 0.0  ;;  %v5751_v1 = vmul.f32 %v9237_v54, %v5612_v43  ;;  %v7259_v36 = vpop.f32.mrb[10].mxu1 }
 0x61b   : > { %5882 = vst.msk [vmem:[%s9257_s25 + $0x38] sm:$0xff] %vm258_vm1, %v5850_v0  ;;  %v5789_v13 = vadd.f32 %v9242_v48, %v5753_v57  ;;  %v5754_v6 = vmul.f32 %v7259_v36, %v9237_v54  ;;  %v5615_v55 = vpop.f32.mrb[11].mxu1  ;;  %v9514_v0 = vunpack.c.l.bf16 %v8160_v27 }
 0x61c   : > { %5880 = vst.msk [vmem:[%s9257_s25 + $0x28] sm:$0xff] %vm258_vm1, %v5848_v61  ;;  %v5787_v44 = vadd.f32 %v9242_v48, %v5751_v1  ;;  %v5752_v46 = vmul.f32 %v9237_v54, %v5615_v55  ;;  %v9515_v61 = vunpack.c.l.bf16 %v8157_v26 }
 0x61d   : > { %v5821_v21 = vadd.f32 %v9506_v63, %v5789_v13  ;;  %v5790_v49 = vadd.f32 %v9242_v48, %v5754_v6  ;;  %v9516_v6 = vunpack.c.h.bf16 %v8160_v27 }
 0x61e   : > { %v5819_v37 = vadd.f32 %v9507_v42, %v5787_v44  ;;  %v5788_v40 = vadd.f32 %v9242_v48, %v5752_v46  ;;  %v9517_v46 = vunpack.c.h.bf16 %v8157_v26 }
 0x61f   : > { %v5853_v15 = vmax.f32 %v5821_v21, 0.0  ;;  %v5822_v24 = vadd.f32 %v9508_v51, %v5790_v49 }
 0x620   : > { %v5851_v39 = vmax.f32 %v5819_v37, 0.0  ;;  %v5820_v11 = vadd.f32 %v9509_v2, %v5788_v40  ;;  %v7262_v29 = vpop.f32.mrb[12].mxu1 }
 0x621   : > { %5885 = vst.msk [vmem:[%s9257_s25 + $0x50] sm:$0xff] %vm258_vm1, %v5853_v15  ;;  %v5854_v7 = vmax.f32 %v5822_v24, 0.0  ;;  %v5757_v17 = vmul.f32 %v7262_v29, %v9237_v54  ;;  %v5628_v52 = vpop.f32.mrb[13].mxu1 }
 0x622   : > { %5883 = vst.msk [vmem:[%s9257_s25 + $0x40] sm:$0xff] %vm258_vm1, %v5851_v39  ;;  %v5852_v30 = vmax.f32 %v5820_v11, 0.0  ;;  %v5755_v53 = vmul.f32 %v9237_v54, %v5628_v52  ;;  %v7263_v8 = vpop.f32.mrb[14].mxu1  ;;  %v9518_v11 = vunpack.c.l.bf16 %v8180_v33 }
 0x623   : > { %5886 = vst.msk [vmem:[%s9257_s25 + $0x58] sm:$0xff] %vm258_vm1, %v5854_v7  ;;  %v5793_v19 = vadd.f32 %v9242_v48, %v5757_v17  ;;  %v5758_v18 = vmul.f32 %v7263_v8, %v9237_v54  ;;  %v5631_v41 = vpop.f32.mrb[15].mxu1  ;;  %v9519_v17 = vld [vmem:[#allocation4_spill] sm:$0xff] }
 0x624   : > { %5884 = vst.msk [vmem:[%s9257_s25 + $0x48] sm:$0xff] %vm258_vm1, %v5852_v30  ;;  %v5791_v9 = vadd.f32 %v9242_v48, %v5755_v53  ;;  %v5756_v10 = vmul.f32 %v9237_v54, %v5631_v41  ;;  %v9520_v52 = vunpack.c.l.bf16 %v9519_v17 }
 0x625   : > { %v5825_v34 = vadd.f32 %v9510_v32, %v5793_v19  ;;  %v5794_v50 = vadd.f32 %v9242_v48, %v5758_v18  ;;  %v9521_v19 = vunpack.c.h.bf16 %v8180_v33 }
 0x626   : > { %v5823_v5 = vadd.f32 %v9511_v22, %v5791_v9  ;;  %v5792_v4 = vadd.f32 %v9242_v48, %v5756_v10  ;;  %v9522_v9 = vunpack.c.h.bf16 %v9519_v17 }
 0x627   : > { %v5857_v14 = vmax.f32 %v5825_v34, 0.0  ;;  %v5826_v35 = vadd.f32 %v9512_v60, %v5794_v50 }
 0x628   : > { %v5855_v23 = vmax.f32 %v5823_v5, 0.0  ;;  %v5824_v62 = vadd.f32 %v9513_v59, %v5792_v4  ;;  %v7266_v56 = vpop.f32.mrb[16].mxu1 }
 0x629   : > { %5889 = vst.msk [vmem:[%s9257_s25 + $0x70] sm:$0xff] %vm258_vm1, %v5857_v14  ;;  %v5858_v3 = vmax.f32 %v5826_v35, 0.0  ;;  %v5761_v31 = vmul.f32 %v7266_v56, %v9237_v54  ;;  %v5644_v47 = vpop.f32.mrb[17].mxu1 }
 0x62a   : > { %5887 = vst.msk [vmem:[%s9257_s25 + $0x60] sm:$0xff] %vm258_vm1, %v5855_v23  ;;  %v5856_v58 = vmax.f32 %v5824_v62, 0.0  ;;  %v5759_v28 = vmul.f32 %v9237_v54, %v5644_v47  ;;  %v7267_v12 = vpop.f32.mrb[18].mxu1  ;;  %v9523_v62 = vld [vmem:[#allocation6_spill] sm:$0xff]  ;;  %v9525_v47 = vld [vmem:[#allocation5_spill] sm:$0xff] }
 0x62b   : > { %5890 = vst.msk [vmem:[%s9257_s25 + $0x78] sm:$0xff] %vm258_vm1, %v5858_v3  ;;  %v5797_v25 = vadd.f32 %v9242_v48, %v5761_v31  ;;  %v5762_v20 = vmul.f32 %v7267_v12, %v9237_v54  ;;  %v5647_v45 = vpop.f32.mrb[19].mxu1  ;;  %v9524_v56 = vunpack.c.l.bf16 %v9523_v62 }
 0x62c   : > { %5888 = vst.msk [vmem:[%s9257_s25 + $0x68] sm:$0xff] %vm258_vm1, %v5856_v58  ;;  %v5795_v16 = vadd.f32 %v9242_v48, %v5759_v28  ;;  %v5760_v38 = vmul.f32 %v9237_v54, %v5647_v45  ;;  %v9526_v58 = vunpack.c.l.bf16 %v9525_v47 }
 0x62d   : > { %v5829_v57 = vadd.f32 %v9514_v0, %v5797_v25  ;;  %v5798_v43 = vadd.f32 %v9242_v48, %v5762_v20  ;;  %v9527_v20 = vunpack.c.h.bf16 %v9523_v62 }
 0x62e   : > { %v5827_v1 = vadd.f32 %v9515_v61, %v5795_v16  ;;  %v5796_v36 = vadd.f32 %v9242_v48, %v5760_v38  ;;  %v9528_v38 = vunpack.c.h.bf16 %v9525_v47 }
 0x62f   : > { %v5861_v13 = vmax.f32 %v5829_v57, 0.0  ;;  %v5830_v55 = vadd.f32 %v9516_v6, %v5798_v43 }
 0x630   : > { %v5859_v44 = vmax.f32 %v5827_v1, 0.0  ;;  %v5828_v63 = vadd.f32 %v9517_v46, %v5796_v36  ;;  %v7270_v21 = vpop.f32.mrb[20].mxu1 }
 0x631   : > { %5893 = vst.msk [vmem:[%s9257_s25 + $0x90] sm:$0xff] %vm258_vm1, %v5861_v13  ;;  %v5862_v49 = vmax.f32 %v5830_v55, 0.0  ;;  %v5765_v42 = vmul.f32 %v7270_v21, %v9237_v54  ;;  %v5660_v37 = vpop.f32.mrb[21].mxu1 }
 0x632   : > { %5891 = vst.msk [vmem:[%s9257_s25 + $0x80] sm:$0xff] %vm258_vm1, %v5859_v44  ;;  %v5860_v40 = vmax.f32 %v5828_v63, 0.0  ;;  %v5763_v15 = vmul.f32 %v9237_v54, %v5660_v37  ;;  %v7271_v51 = vpop.f32.mrb[22].mxu1 }
 0x633   : > { %5894 = vst.msk [vmem:[%s9257_s25 + $0x98] sm:$0xff] %vm258_vm1, %v5862_v49  ;;  %v5801_v27 = vadd.f32 %v9242_v48, %v5765_v42  ;;  %v5766_v26 = vmul.f32 %v7271_v51, %v9237_v54  ;;  %v5663_v24 = vpop.f32.mrb[23].mxu1  ;;  %v9529_v49 = vld [vmem:[#allocation8_spill] sm:$0xff] }
 0x634   : > { %5892 = vst.msk [vmem:[%s9257_s25 + $0x88] sm:$0xff] %vm258_vm1, %v5860_v40  ;;  %v5799_v39 = vadd.f32 %v9242_v48, %v5763_v15  ;;  %v5764_v2 = vmul.f32 %v9237_v54, %v5663_v24  ;;  %v9530_v42 = vunpack.c.l.bf16 %v9529_v49  ;;  %v9531_v15 = vld [vmem:[#allocation7_spill] sm:$0xff] }
 0x635   : > { %v5833_v29 = vadd.f32 %v9518_v11, %v5801_v27  ;;  %v5802_v7 = vadd.f32 %v9242_v48, %v5766_v26  ;;  %v9532_v51 = vunpack.c.l.bf16 %v9531_v15 }
 0x636   : > { %v5831_v30 = vadd.f32 %v9520_v52, %v5799_v39  ;;  %v5800_v53 = vadd.f32 %v9242_v48, %v5764_v2  ;;  %v9533_v39 = vunpack.c.h.bf16 %v9529_v49 }
 0x637   : > { %v5865_v8 = vmax.f32 %v5833_v29, 0.0  ;;  %v5834_v18 = vadd.f32 %v9521_v19, %v5802_v7  ;;  %v9534_v29 = vunpack.c.h.bf16 %v9531_v15 }
 0x638   : > { %v5863_v41 = vmax.f32 %v5831_v30, 0.0  ;;  %v5832_v10 = vadd.f32 %v9522_v9, %v5800_v53  ;;  %v7274_v32 = vpop.f32.mrb[24].mxu1 }
 0x639   : > { %5897 = vst.msk [vmem:[%s9257_s25 + $0xb0] sm:$0xff] %vm258_vm1, %v5865_v8  ;;  %v5866_v34 = vmax.f32 %v5834_v18, 0.0  ;;  %v5769_v50 = vmul.f32 %v7274_v32, %v9237_v54  ;;  %v5676_v22 = vpop.f32.mrb[25].mxu1 }
 0x63a   : > { %5895 = vst.msk [vmem:[%s9257_s25 + $0xa0] sm:$0xff] %vm258_vm1, %v5863_v41  ;;  %v5864_v5 = vmax.f32 %v5832_v10, 0.0  ;;  %v5767_v4 = vmul.f32 %v9237_v54, %v5676_v22  ;;  %v7275_v14 = vpop.f32.mrb[26].mxu1 }
 0x63b   : > { %5898 = vst.msk [vmem:[%s9257_s25 + $0xb8] sm:$0xff] %vm258_vm1, %v5866_v34  ;;  %v5805_v33 = vadd.f32 %v9242_v48, %v5769_v50  ;;  %v5770_v60 = vmul.f32 %v7275_v14, %v9237_v54  ;;  %v5679_v35 = vpop.f32.mrb[27].mxu1 }
 0x63c   : > { %5896 = vst.msk [vmem:[%s9257_s25 + $0xa8] sm:$0xff] %vm258_vm1, %v5864_v5  ;;  %v5803_v23 = vadd.f32 %v9242_v48, %v5767_v4  ;;  %v5768_v59 = vmul.f32 %v9237_v54, %v5679_v35 }
 0x63d   : > { %v5837_v3 = vadd.f32 %v9524_v56, %v5805_v33  ;;  %v5806_v31 = vadd.f32 %v9242_v48, %v5770_v60 }
 0x63e   : > { %v5835_v28 = vadd.f32 %v9526_v58, %v5803_v23  ;;  %v5804_v12 = vadd.f32 %v9242_v48, %v5768_v59 }
 0x63f   : > { %v5869_v25 = vmax.f32 %v5837_v3, 0.0  ;;  %v5838_v45 = vadd.f32 %v9527_v20, %v5806_v31 }
 0x640   : > { %v5867_v16 = vmax.f32 %v5835_v28, 0.0  ;;  %v5836_v0 = vadd.f32 %v9528_v38, %v5804_v12  ;;  %v7278_v57 = vpop.f32.mrb[28].mxu1 }
 0x641   : > { %5901 = vst.msk [vmem:[%s9257_s25 + $0xd0] sm:$0xff] %vm258_vm1, %v5869_v25  ;;  %v5870_v43 = vmax.f32 %v5838_v45, 0.0  ;;  %v5773_v61 = vmul.f32 %v7278_v57, %v9237_v54  ;;  %v5692_v1 = vpop.f32.mrb[29].mxu1 }
 0x642   : > { %5899 = vst.msk [vmem:[%s9257_s25 + $0xc0] sm:$0xff] %vm258_vm1, %v5867_v16  ;;  %v5868_v36 = vmax.f32 %v5836_v0, 0.0  ;;  %v5771_v13 = vmul.f32 %v9237_v54, %v5692_v1  ;;  %v7279_v6 = vpop.f32.mrb[30].mxu1 }
 0x643   : > { %5902 = vst.msk [vmem:[%s9257_s25 + $0xd8] sm:$0xff] %vm258_vm1, %v5870_v43  ;;  %v5809_v55 = vadd.f32 %v9242_v48, %v5773_v61  ;;  %v5774_v44 = vmul.f32 %v7279_v6, %v9237_v54  ;;  %v5695_v46 = vpop.f32.mrb[31].mxu1 }
 0x644   : > { %5900 = vst.msk [vmem:[%s9257_s25 + $0xc8] sm:$0xff] %vm258_vm1, %v5868_v36  ;;  %v5807_v63 = vadd.f32 %v9242_v48, %v5771_v13  ;;  %v5772_v21 = vmul.f32 %v9237_v54, %v5695_v46 }
 0x645   : > { %v5841_v37 = vadd.f32 %v9530_v42, %v5809_v55  ;;  %v5810_v40 = vadd.f32 %v9242_v48, %v5774_v44 }
 0x646   : > { %v5839_v27 = vadd.f32 %v9532_v51, %v5807_v63  ;;  %v5808_v26 = vadd.f32 %v9242_v48, %v5772_v21 }
 0x647   : > { %v5873_v24 = vmax.f32 %v5841_v37, 0.0  ;;  %v5842_v2 = vadd.f32 %v9533_v39, %v5810_v40 }
 0x648   : > { %v5871_v11 = vmax.f32 %v5839_v27, 0.0  ;;  %v5840_v7 = vadd.f32 %v9534_v29, %v5808_v26 }
 0x649   : > { %5905 = vst.msk [vmem:[%s9257_s25 + $0xf0] sm:$0xff] %vm258_vm1, %v5873_v24  ;;  %v5874_v54 = vmax.f32 %v5842_v2, 0.0 }
 0x64a   : > { %5903 = vst.msk [vmem:[%s9257_s25 + $0xe0] sm:$0xff] %vm258_vm1, %v5871_v11  ;;  %v5872_v17 = vmax.f32 %v5840_v7, 0.0 }
 0x64b   : > { %5906 = vst.msk [vmem:[%s9257_s25 + $0xf8] sm:$0xff] %vm258_vm1, %v5874_v54 }
 0x64c   : > { %5904 = vst.msk [vmem:[%s9257_s25 + $0xe8] sm:$0xff] %vm258_vm1, %v5872_v17 }
 0x64d PF: > { %s15_s18 = sadd.s32 1, %s7825_s18  }
 0x64e   : > { %p12_p4 = scmp.ge.s32.totalorder %s15_s18, 4  }
 0x650   :  { %14 = sbr.rel (!%p12_p4) target bundleno = 1 (0x1), region = 90 }

</bundles_post_ra>
